<compile_context>
chip_gen: v5e
topology: v5e:2x2
jax: 0.10.0
libtpu: 0.0.40
codegen_flags: <defaults>
</compile_context>

<pallas_src>
import functools

import numpy as np
import jax
import jax.numpy as jnp
from jax.experimental import pallas as pl
from jax.experimental.pallas import tpu as pltpu


# ----------------------------------------------------------------------------- kernel
def _purify_kernel(img_k_ref, e_k_ref, w_ref,                    # K-slab inputs (matmul)
                   img_n_ref, e_n_ref, z_ref, b_ref, wscale_ref,  # N-slab inputs (Euler out)
                   out_ref, acc_ref,
                   *, sqrt_a, sqrt_1ma, c_x, c_e, c_score, c_z, c_b):
    k = pl.program_id(1)

    @pl.when(k == 0)
    def _():
        acc_ref[...] = jnp.zeros_like(acc_ref)

    # noise_add restricted to the current K slab -> matmul LHS (bf16 MXU path, f32 acc)
    x_k = (img_k_ref[...] * sqrt_a + e_k_ref[...] * sqrt_1ma).astype(jnp.bfloat16)
    # bf16 W: no-op cast.  int8 W: in-register dequant (per-column scale folded into the
    # finalize), portable to v7x which has no integer MXU path.
    w = w_ref[...].astype(jnp.bfloat16)
    acc_ref[...] += jnp.dot(x_k, w, preferred_element_type=jnp.float32)

    @pl.when(k == pl.num_programs(1) - 1)
    def _():
        # Euler–Maruyama step on the current N slab; all SDE constants are compile-time
        # immediates.  (Finalize path has huge VPU slack; kernel is W-HBM-bound.)
        score_term = acc_ref[...] * (wscale_ref[...] * c_score)
        out_ref[...] = (img_n_ref[...] * c_x
                        + e_n_ref[...] * c_e
                        + score_term
                        + b_ref[...] * c_b        # = c_score * t_label * b
                        + z_ref[...] * c_z)


# --------------------------------------------------------------------------- helpers
def _sde_constants(t_steps, beta_min, beta_max, N):
    """All schedule / reverse-SDE scalars, computed host-side in numpy (no device ops)."""
    betas = np.linspace(beta_min / N, beta_max / N, N, dtype=np.float64)
    a_t = float(np.cumprod(1.0 - betas)[t_steps - 1])
    sqrt_a = float(np.sqrt(a_t))
    sqrt_1ma = float(np.sqrt(1.0 - a_t))

    t0 = 1.0 - t_steps / 1000.0
    t1 = 1.0 - 1e-5
    dt = t1 - t0
    s = 1.0 - t0                                   # reverse time of the step
    beta_s = beta_min + s * (beta_max - beta_min)
    acp_cont = float(np.exp(-0.5 * (beta_max - beta_min) * s ** 2 - beta_min * s))
    std = float(np.sqrt(1.0 - acp_cont))
    std_inv = 1.0 / std
    t_label = s * 999.0
    euler = 1.0 + 0.5 * beta_s * dt
    c_score = -beta_s * std_inv * dt
    return dict(
        sqrt_a=sqrt_a, sqrt_1ma=sqrt_1ma,
        c_x=sqrt_a * euler, c_e=sqrt_1ma * euler,
        c_score=c_score,
        c_z=float(np.sqrt(beta_s) * np.sqrt(dt)),
        c_b=c_score * t_label,
        t_label=t_label, std=std, beta_s=beta_s, dt=dt,
    )


def _pick_tile(dim, cap):
    """Largest multiple-of-128 divisor of `dim` that is <= cap (dim is a multiple of 128,
    so 128 is always a valid fallback)."""
    cap = max(128, min(cap, dim))
    start = (cap // 128) * 128
    for t in range(start, 127, -128):
        if dim % t == 0:
            return t
    return 128


# --------------------------------------------------------------------------- wrapper
def rev_guided_diffusion_forward(X, W, b, e, z, *, t_steps=100,
                                 beta_min=0.1, beta_max=20.0, N=1000,
                                 tile_n=2048, tile_k=2048,
                                 w_format="bf16", w_buffers=2):
    assert w_format in ("bf16", "int8")
    B = X.shape[0]
    D = int(np.prod(X.shape[1:]))

    c = _sde_constants(t_steps, beta_min, beta_max, N)

    # --- pad batch to >=8 sublanes, feature dim to a multiple of 128 (no assert) -----
    # TODO(synk): amortize W traffic by stacking more samples / SDE sub-steps into the
    #             batch before padding (Bp -> 128-256); with Bp=8 the kernel is purely
    #             W-HBM-bandwidth-bound and extra rows are essentially free.
    Bp = max(8, ((B + 7) // 8) * 8)
    Dp = ((D + 127) // 128) * 128

    def _pad(arr, rows, cols):
        arr = arr.astype(jnp.float32)
        return jnp.pad(arr, ((0, rows - arr.shape[0]), (0, cols - arr.shape[1])))

    img_p = _pad(X.reshape(B, D), Bp, Dp)
    e_p = _pad(e, Bp, Dp)
    z_p = _pad(z, Bp, Dp)
    b_p = _pad(b.reshape(1, D), 1, Dp)
    W_p = _pad(W, Dp, Dp)

    # --- weight stream: bf16, or int8 + per-output-column scale ----------------------
    # TODO(synk): on v7x an fp8(e4m3) weight stream is the native sub-bf16 MXU dtype;
    #             the int8+scale scheme here already captures the HBM-bytes win and is
    #             portable to all three chips (dequant happens in-register).
    if w_format == "int8":
        absmax = jnp.max(jnp.abs(W_p), axis=0, keepdims=True)              # (1, Dp)
        w_scale = jnp.where(absmax > 0.0, absmax / 127.0, 1.0).astype(jnp.float32)
        W_stream = jnp.round(W_p / w_scale).astype(jnp.int8)
        w_elem_bytes = 1
    else:
        w_scale = jnp.ones((1, Dp), jnp.float32)
        W_stream = W_p.astype(jnp.bfloat16)
        w_elem_bytes = 2

    # --- per-generation tile sizing against the chip's VMEM budget -------------------
    try:
        info = pltpu.get_tpu_info()
        vmem_cap = int(getattr(info, "vmem_capacity_bytes", 64 << 20))
    except Exception:
        vmem_cap = 64 << 20                  # conservative: v7x per-TC VMEM
    vmem_cap = max(32 << 20, min(vmem_cap, 128 << 20))

    TN = _pick_tile(Dp, tile_n)
    if Dp // TN < 2 and Dp >= 256:
        # keep >=2 output-column tiles so v7x's two TensorCores both get W slabs on the
        # "parallel" N axis; costs nothing on single-TC v5e/v6e.
        TN = _pick_tile(Dp, Dp // 2)
    TK = _pick_tile(Dp, tile_k)

    w_budget = int(0.40 * vmem_cap)          # budget for the multi-buffered W tile
    while w_buffers * TK * TN * w_elem_bytes > w_budget and TK > 128:
        TK = _pick_tile(Dp, TK - 128)
    while w_buffers * TK * TN * w_elem_bytes > w_budget and TN > 128:
        TN = _pick_tile(Dp, TN - 128)

    nn, nk = Dp // TN, Dp // TK
    grid = (nn, nk)     # (output-column tiles [parallel], K tiles [arbitrary, last])

    # VMEM actually used (pipelined buffers + resident accumulator) -> honest limit.
    vmem_needed = (w_buffers * TK * TN * w_elem_bytes              # W stream
                   + 2 * 2 * Bp * TK * 4                           # img/e K slabs (x2 buf)
                   + 2 * (3 * Bp * TN * 4 + 2 * TN * 4 + Bp * TN * 4)  # N slabs+bias+scale+out
                   + Bp * TN * 4)                                  # f32 accumulator
    vmem_limit = int(min(0.85 * vmem_cap, max(vmem_needed + (8 << 20), 48 << 20)))

    kernel = functools.partial(
        _purify_kernel,
        sqrt_a=c["sqrt_a"], sqrt_1ma=c["sqrt_1ma"],
        c_x=c["c_x"], c_e=c["c_e"], c_score=c["c_score"],
        c_z=c["c_z"], c_b=c["c_b"])

    if w_buffers != 2:
        # e.g. v5e: a 3rd W buffer hides DMA-issue jitter between K steps.
        w_spec = pl.BlockSpec((TK, TN), lambda n, k: (k, n),
                              pipeline_mode=pl.Buffered(w_buffers))
    else:
        w_spec = pl.BlockSpec((TK, TN), lambda n, k: (k, n))

    grid_spec = pltpu.PrefetchScalarGridSpec(
        num_scalar_prefetch=0,
        grid=grid,
        in_specs=[
            pl.BlockSpec((Bp, TK), lambda n, k: (0, k)),   # img  (K slab)
            pl.BlockSpec((Bp, TK), lambda n, k: (0, k)),   # e    (K slab)
            w_spec,                                        # W tile (bf16 / int8)
            pl.BlockSpec((Bp, TN), lambda n, k: (0, n)),   # img  (N slab)
            pl.BlockSpec((Bp, TN), lambda n, k: (0, n)),   # e    (N slab)
            pl.BlockSpec((Bp, TN), lambda n, k: (0, n)),   # z    (Brownian)
            pl.BlockSpec((1, TN),  lambda n, k: (0, n)),   # bias
            pl.BlockSpec((1, TN),  lambda n, k: (0, n)),   # per-column W scale
        ],
        out_specs=pl.BlockSpec((Bp, TN), lambda n, k: (0, n)),
        scratch_shapes=[pltpu.VMEM((Bp, TN), jnp.float32)],    # f32 accumulator
    )

    cost = pl.CostEstimate(
        flops=2 * Bp * Dp * Dp + 10 * Bp * Dp,
        transcendentals=0,
        bytes_accessed=(Dp * Dp * w_elem_bytes          # W streamed once
                        + 2 * Bp * Dp * 4 * nn          # img/e K slabs re-read per N tile
                        + 3 * Bp * Dp * 4               # img/e/z N slabs
                        + 2 * Dp * 4                    # bias + scale
                        + Bp * Dp * 4),                 # output
    )

    out_p = pl.pallas_call(
        kernel,
        out_shape=jax.ShapeDtypeStruct((Bp, Dp), jnp.float32),
        grid_spec=grid_spec,
        compiler_params=pltpu.CompilerParams(
            dimension_semantics=("parallel", "arbitrary"),
            vmem_limit_bytes=vmem_limit,
        ),
        cost_estimate=cost,
    )(img_p, e_p, W_stream, img_p, e_p, z_p, b_p, w_scale)

    return out_p[:B, :D].reshape(X.shape)


# ------------------------------------------------------------------------- reference
def _reference_forward(X, W, b, e, z, *, t_steps=100,
                       beta_min=0.1, beta_max=20.0, N=1000):
    """Pure-JAX f32 reference mirroring the PyTorch semantics."""
    c = _sde_constants(t_steps, beta_min, beta_max, N)
    B = X.shape[0]
    D = int(np.prod(X.shape[1:]))
    img = X.reshape(B, D).astype(jnp.float32)

    x = img * c["sqrt_a"] + e * c["sqrt_1ma"]
    model_out = x @ W + c["t_label"] * b
    score = -model_out / c["std"]
    drift = 0.5 * c["beta_s"] * x + c["beta_s"] * score
    x1 = x + drift * c["dt"] + np.sqrt(c["beta_s"]) * np.sqrt(c["dt"]) * z
    return x1.reshape(X.shape)


if __name__ == "__main__":
    B, C, H, Wd = 2, 4, 16, 16
    D = C * H * Wd          # 1024
    t_steps = 100

    key = jax.random.PRNGKey(0)
    kx, ke, kz, kw, kb = jax.random.split(key, 5)
    X = jax.random.normal(kx, (B, C, H, Wd), dtype=jnp.float32)
    e = jax.random.normal(ke, (B, D), dtype=jnp.float32)       # noise_add noise
    z = jax.random.normal(kz, (B, D), dtype=jnp.float32)       # Brownian increment
    Wmat = jax.random.normal(kw, (D, D), dtype=jnp.float32) * 0.02
    bvec = jax.random.normal(kb, (1, D), dtype=jnp.float32) * 0.01

    ref = np.asarray(jax.block_until_ready(
        _reference_forward(X, Wmat, bvec, e, z, t_steps=t_steps)))

    # Default path: bf16 weight stream, f32 accumulation.
    out = rev_guided_diffusion_forward(X, Wmat, bvec, e, z, t_steps=t_steps)
    out = np.asarray(jax.block_until_ready(out))
    np.testing.assert_allclose(out, ref, rtol=2e-2, atol=2e-2)

    # Quantized path: int8 weights + per-output-column scales (halves the dominant
    # W HBM stream; dequant is in-register so it runs unchanged on v5e/v6e/v7x).
    out_q = rev_guided_diffusion_forward(X, Wmat, bvec, e, z, t_steps=t_steps,
                                         w_format="int8")
    out_q = np.asarray(jax.block_until_ready(out_q))
    np.testing.assert_allclose(out_q, ref, rtol=3e-2, atol=3e-2)

    print("KERNEL_OK")
</pallas_src>

<mosaic_0001>
module attributes {stable_mosaic.version = 11 : i64} {
  func.func @_purify_kernel(%arg0: i32, %arg1: i32, %arg2: memref<8x1024xf32, #tpu.memory_space<vmem>>, %arg3: memref<8x1024xf32, #tpu.memory_space<vmem>>, %arg4: memref<1024x512xbf16, #tpu.memory_space<vmem>>, %arg5: memref<8x512xf32, #tpu.memory_space<vmem>>, %arg6: memref<8x512xf32, #tpu.memory_space<vmem>>, %arg7: memref<8x512xf32, #tpu.memory_space<vmem>>, %arg8: memref<1x512xf32, #tpu.memory_space<vmem>>, %arg9: memref<1x512xf32, #tpu.memory_space<vmem>>, %arg10: memref<8x512xf32, #tpu.memory_space<vmem>>, %arg11: memref<8x512xf32, #tpu.memory_space<vmem>>) attributes {dimension_semantics = [#tpu.dimension_semantics<parallel>, #tpu.dimension_semantics<arbitrary>], iteration_bounds = array<i64: 2, 1>, scalar_prefetch = 0 : i64, scratch_operands = 1 : i64, tpu.core_type = #tpu.core_type<tc>, window_params = [{transform_indices = @transform_0, window_bounds = array<i64: 8, 1024>}, {transform_indices = @transform_1, window_bounds = array<i64: 8, 1024>}, {transform_indices = @transform_2, window_bounds = array<i64: 1024, 512>}, {transform_indices = @transform_3, window_bounds = array<i64: 8, 512>}, {transform_indices = @transform_4, window_bounds = array<i64: 8, 512>}, {transform_indices = @transform_5, window_bounds = array<i64: 8, 512>}, {transform_indices = @transform_6, window_bounds = array<i64: 1, 512>}, {transform_indices = @transform_7, window_bounds = array<i64: 1, 512>}, {transform_indices = @transform_8, window_bounds = array<i64: 8, 512>}]} {
    %c0_i32 = arith.constant 0 : i32
    %0 = arith.cmpi eq, %arg1, %c0_i32 : i32
    %1 = arith.extui %0 : i1 to i32
    %c0_i32_0 = arith.constant 0 : i32
    %2 = arith.cmpi ne, %1, %c0_i32_0 : i32
    scf.if %2 {
      %cst_14 = arith.constant 0.000000e+00 : f32
      %19 = vector.broadcast %cst_14 : f32 to vector<8x512xf32>
      %c0_15 = arith.constant 0 : index
      %c0_16 = arith.constant 0 : index
      %20 = vector.load %arg11[%c0_15, %c0_16] : memref<8x512xf32, #tpu.memory_space<vmem>>, vector<8x512xf32>
      tpu.vector_store %arg11[%c0_15, %c0_16], %19 {strides = array<i32>} : memref<8x512xf32, #tpu.memory_space<vmem>>, vector<8x512xf32>,
    } else {
    }
    %c0 = arith.constant 0 : index
    %c0_1 = arith.constant 0 : index
    %3 = vector.load %arg2[%c0, %c0_1] : memref<8x1024xf32, #tpu.memory_space<vmem>>, vector<8x1024xf32>
    %cst = arith.constant 0.947110414 : f32
    %4 = vector.broadcast %cst : f32 to vector<8x1024xf32>
    %5 = arith.mulf %3, %4 : vector<8x1024xf32>
    %c0_2 = arith.constant 0 : index
    %c0_3 = arith.constant 0 : index
    %6 = vector.load %arg3[%c0_2, %c0_3] : memref<8x1024xf32, #tpu.memory_space<vmem>>, vector<8x1024xf32>
    %cst_4 = arith.constant 0.320907861 : f32
    %7 = vector.broadcast %cst_4 : f32 to vector<8x1024xf32>
    %8 = arith.mulf %6, %7 : vector<8x1024xf32>
    %9 = arith.addf %5, %8 : vector<8x1024xf32>
    %10 = arith.truncf %9 : vector<8x1024xf32> to vector<8x1024xbf16>
    %c0_5 = arith.constant 0 : index
    %c0_6 = arith.constant 0 : index
    %11 = vector.load %arg4[%c0_5, %c0_6] : memref<1024x512xbf16, #tpu.memory_space<vmem>>, vector<1024x512xbf16>
    %c0_7 = arith.constant 0 : index
    %c0_8 = arith.constant 0 : index
    %12 = vector.load %arg11[%c0_7, %c0_8] : memref<8x512xf32, #tpu.memory_space<vmem>>, vector<8x512xf32>
    %cst_9 = arith.constant dense<0.000000e+00> : vector<8x512xf32>
    %13 = tpu.matmul %10, %11, %cst_9 {dimension_numbers = #tpu.dot_dimension_numbers<[1], [0], [0], [1], [0, 0, 1, 1], [], []>} : vector<8x1024xbf16>, vector<1024x512xbf16>, vector<8x512xf32> -> vector<8x512xf32>
    %14 = arith.addf %12, %13 : vector<8x512xf32>
    %c0_10 = arith.constant 0 : index
    %c0_11 = arith.constant 0 : index
    %15 = vector.load %arg11[%c0_10, %c0_11] : memref<8x512xf32, #tpu.memory_space<vmem>>, vector<8x512xf32>
    tpu.vector_store %arg11[%c0_10, %c0_11], %14 {strides = array<i32>} : memref<8x512xf32, #tpu.memory_space<vmem>>, vector<8x512xf32>,
    %c0_i32_12 = arith.constant 0 : i32
    %16 = arith.cmpi eq, %arg1, %c0_i32_12 : i32
    %17 = arith.extui %16 : i1 to i32
    %c0_i32_13 = arith.constant 0 : i32
    %18 = arith.cmpi ne, %17, %c0_i32_13 : i32
    scf.if %18 {
      %c0_14 = arith.constant 0 : index
      %c0_15 = arith.constant 0 : index
      %19 = vector.load %arg11[%c0_14, %c0_15] : memref<8x512xf32, #tpu.memory_space<vmem>>, vector<8x512xf32>
      %c0_16 = arith.constant 0 : index
      %c0_17 = arith.constant 0 : index
      %20 = vector.load %arg9[%c0_16, %c0_17] : memref<1x512xf32, #tpu.memory_space<vmem>>, vector<1x512xf32>
      %cst_18 = arith.constant -0.648897529 : f32
      %21 = vector.broadcast %cst_18 : f32 to vector<1x512xf32>
      %22 = arith.mulf %20, %21 : vector<1x512xf32>
      %23 = vector.broadcast %22 : vector<1x512xf32> to vector<8x512xf32>
      %24 = arith.mulf %19, %23 : vector<8x512xf32>
      %c0_19 = arith.constant 0 : index
      %c0_20 = arith.constant 0 : index
      %25 = vector.load %arg5[%c0_19, %c0_20] : memref<8x512xf32, #tpu.memory_space<vmem>>, vector<8x512xf32>
      %cst_21 = arith.constant 1.04607356 : f32
      %26 = vector.broadcast %cst_21 : f32 to vector<8x512xf32>
      %27 = arith.mulf %25, %26 : vector<8x512xf32>
      %c0_22 = arith.constant 0 : index
      %c0_23 = arith.constant 0 : index
      %28 = vector.load %arg6[%c0_22, %c0_23] : memref<8x512xf32, #tpu.memory_space<vmem>>, vector<8x512xf32>
      %cst_24 = arith.constant 0.354439378 : f32
      %29 = vector.broadcast %cst_24 : f32 to vector<8x512xf32>
      %30 = arith.mulf %28, %29 : vector<8x512xf32>
      %31 = arith.addf %27, %30 : vector<8x512xf32>
      %32 = arith.addf %31, %24 : vector<8x512xf32>
      %c0_25 = arith.constant 0 : index
      %c0_26 = arith.constant 0 : index
      %33 = vector.load %arg8[%c0_25, %c0_26] : memref<1x512xf32, #tpu.memory_space<vmem>>, vector<1x512xf32>
      %cst_27 = arith.constant -64.8248672 : f32
      %34 = vector.broadcast %cst_27 : f32 to vector<1x512xf32>
      %35 = arith.mulf %33, %34 : vector<1x512xf32>
      %36 = vector.broadcast %35 : vector<1x512xf32> to vector<8x512xf32>
      %37 = arith.addf %32, %36 : vector<8x512xf32>
      %c0_28 = arith.constant 0 : index
      %c0_29 = arith.constant 0 : index
      %38 = vector.load %arg7[%c0_28, %c0_29] : memref<8x512xf32, #tpu.memory_space<vmem>>, vector<8x512xf32>
      %cst_30 = arith.constant 0.457142323 : f32
      %39 = vector.broadcast %cst_30 : f32 to vector<8x512xf32>
      %40 = arith.mulf %38, %39 : vector<8x512xf32>
      %41 = arith.addf %37, %40 : vector<8x512xf32>
      %c0_31 = arith.constant 0 : index
      %c0_32 = arith.constant 0 : index
      %42 = vector.load %arg10[%c0_31, %c0_32] : memref<8x512xf32, #tpu.memory_space<vmem>>, vector<8x512xf32>
      tpu.vector_store %arg10[%c0_31, %c0_32], %41 {strides = array<i32>} : memref<8x512xf32, #tpu.memory_space<vmem>>, vector<8x512xf32>,
    } else {
    }
    return
  }
  func.func @transform_0(%arg0: i32, %arg1: i32) -> (i32, i32) {
    %c0_i32 = arith.constant 0 : i32
    %c0_i32_0 = arith.constant 0 : i32
    return %c0_i32, %arg1 : i32, i32
  }
  func.func @transform_1(%arg0: i32, %arg1: i32) -> (i32, i32) {
    %c0_i32 = arith.constant 0 : i32
    %c0_i32_0 = arith.constant 0 : i32
    return %c0_i32, %arg1 : i32, i32
  }
  func.func @transform_2(%arg0: i32, %arg1: i32) -> (i32, i32) {
    %c0_i32 = arith.constant 0 : i32
    return %arg1, %arg0 : i32, i32
  }
  func.func @transform_3(%arg0: i32, %arg1: i32) -> (i32, i32) {
    %c0_i32 = arith.constant 0 : i32
    %c0_i32_0 = arith.constant 0 : i32
    return %c0_i32, %arg0 : i32, i32
  }
  func.func @transform_4(%arg0: i32, %arg1: i32) -> (i32, i32) {
    %c0_i32 = arith.constant 0 : i32
    %c0_i32_0 = arith.constant 0 : i32
    return %c0_i32, %arg0 : i32, i32
  }
  func.func @transform_5(%arg0: i32, %arg1: i32) -> (i32, i32) {
    %c0_i32 = arith.constant 0 : i32
    %c0_i32_0 = arith.constant 0 : i32
    return %c0_i32, %arg0 : i32, i32
  }
  func.func @transform_6(%arg0: i32, %arg1: i32) -> (i32, i32) {
    %c0_i32 = arith.constant 0 : i32
    %c0_i32_0 = arith.constant 0 : i32
    return %c0_i32, %arg0 : i32, i32
  }
  func.func @transform_7(%arg0: i32, %arg1: i32) -> (i32, i32) {
    %c0_i32 = arith.constant 0 : i32
    %c0_i32_0 = arith.constant 0 : i32
    return %c0_i32, %arg0 : i32, i32
  }
  func.func @transform_8(%arg0: i32, %arg1: i32) -> (i32, i32) {
    %c0_i32 = arith.constant 0 : i32
    %c0_i32_0 = arith.constant 0 : i32
    return %c0_i32, %arg0 : i32, i32
  }
}

</mosaic_0001>

<bundles_post_ra>
// kernel: tpu_custom_call.1
= control target key start
LH: loop header
LB: loop body
LE: loop exit
PB: predicated region body
PF: predicated region fallthrough
CT: control target
= control target key end

     0   :  { %s5534_s0 = inlined_call_operand.hbm [shape: f32[8,1024], index: 0, kind: input, shape index: {}]   ;;  %s5535_s1 = inlined_call_operand.hbm [shape: f32[8,1024], index: 1, kind: input, shape index: {}]   ;;  %s5536_s2 = inlined_call_operand.hbm [shape: bf16[1024,1024], index: 2, kind: input, shape index: {}]   ;;  %s5537_s3 = inlined_call_operand.hbm [shape: f32[8,1024], index: 3, kind: input, shape index: {}]   ;;  %s5538_s4 = inlined_call_operand.hbm [shape: f32[8,1024], index: 4, kind: input, shape index: {}]   ;;  %s5539_s5 = inlined_call_operand.hbm [shape: f32[8,1024], index: 5, kind: input, shape index: {}]   ;;  %s5540_s6 = inlined_call_operand.hbm [shape: f32[1,1024], index: 6, kind: input, shape index: {}]   ;;  %s5541_s7 = inlined_call_operand.hbm [shape: f32[1,1024], index: 7, kind: input, shape index: {}]   ;;  %s5542_s8 = inlined_call_operand.hbm [shape: f32[8,1024], index: 8, kind: output, shape index: {}]  }
   0x1   :  { %5552 = sst [smem:[#allocation27_spill]] %s5534_s0 }
   0x2   :  { %5553 = sst [smem:[#allocation28_spill]] %s5542_s8 }
   0x3   :  { %13 = vsyncpa [#allocation4], 0 }
   0x4   :  { %14 = vsyncpa [#allocation7], 0 }
   0x5   :  { %15 = vsyncpa [#allocation5], 0 }
   0x6   :  { %17 = vsyncpa [#allocation5 + $0x1], 0  ;;  %s4712_s27 = smov 0   ;;  %s4714_s28 = smov 0  }
   0x7   :  { %s4716_s29 = smov 0   ;;  %s4718_s30 = smov 0  }
   0x8   :  { %s4720_s9 = smov 0   ;;  %s4722_s10 = smov 0  }
   0x9 LB: > { %5554 = sst [smem:[#allocation19_spill]] %s4640_s27  ;;  %s4743_s11 = sadd.s32 4294967295, %s4660_s10   ;;  %s4660_s10 = sphi %s4722_s10, %s23_s10   ;;  %s4656_s9 = sphi %s4720_s9, %s5582_s9   ;;  %s4652_s30 = sphi %s4718_s30, %s5581_s30   ;;  %s4648_s29 = sphi %s4716_s29, %s5577_s29   ;;  %s4644_s28 = sphi %s4714_s28, %s5580_s28   ;;  %s4640_s27 = sphi %s4712_s27, %s5579_s27  }
   0xa   : > { %5555 = sst [smem:[#allocation20_spill]] %s4648_s29  ;;  %s2898_s12 = sadd.s32 4294967294, %s4660_s10  }
   0xb   : > { %5556 = sst [smem:[#allocation21_spill]] %s4652_s30  ;;  %s35_s13 = sadd.s32 1, %s4656_s9 }
   0xc   : > { %5557 = sst [smem:[#allocation22_spill]] %s4660_s10  ;;  %s96_s14 = sadd.s32 1, %s4648_s29 }
   0xd   : > { %p37_p0 = scmp.ge.s32.totalorder %s35_s13, 2  ;;  %p103_p1 = scmp.ne.s32.totalorder %s4648_s29, %s4644_s28 }
   0xe   : > { %p104_p2 = scmp.eq.s32.totalorder %s4660_s10, 0  ;;  %p109_p3 = scmp.ne.s32.totalorder %s4644_s28, %s4640_s27 }
   0xf   : > { %s5584_s13 = smov (%p37_p0, %s35_s13), 0  ;;  %p110_p5 = scmp.eq.s32.totalorder %s4743_s11, 0 }
  0x10   : > { %5558 = sst [smem:[#allocation23_spill]] %s5584_s13  ;;  %p4755_p4 = por %p104_p2, %p103_p1 }
  0x11   : > { %s92_s16 = ssub.s32 %s4656_s9, %s5584_s13  ;;  %p263_p6 = scmp.eq.s32.totalorder %s4743_s11, 1 }
  0x12   : > { %p94_p7 = scmp.eq.s32.totalorder %s92_s16, 0  ;;  %p4765_p8 = por %p110_p5, %p109_p3 }
  0x13   : > { %p4769_p9 = por %p263_p6, %p103_p1  ;;  %p269_p10 = scmp.eq.s32.totalorder %s2898_s12, 1 }
  0x14   : > { %s4774_s19 = scalar_select %p94_p7, %s4648_s29, %s96_s14  }
  0x15   : > { %s5561_s18 = scalar_select %p4769_p9, 1, 0 }
  0x16   : > { %5563 = sst [smem:[#allocation25_spill]] %s4774_s19  ;;  %p4776_p11 = por %p269_p10, %p109_p3 }
  0x17   : > { %5562 = sst [smem:[#allocation24_spill]] %s5561_s18  ;;  %p2899_p12 = scmp.ge.s32.totalorder %s4660_s10, 1 }
  0x18   : > { %s5564_s20 = scalar_select %p4776_p11, 1, 0 }
  0x19   : > { %p276_p13 = scmp.lt.s32.totalorder %s4660_s10, 3  ;;  %s5566_s0 = sld [smem:[#allocation27_spill]] }
  0x1a   : > { %5565 = sst [smem:[#allocation26_spill]] %s5564_s20  ;;  %s4662_s25 = smov [#allocation3]  }
  0x1b   : > { %p4785_p0 = pnand %p2899_p12, %p276_p13  ;;  %s293_s26 = sshll.u32 %s4662_s25, 4  ;;  %s294_s26 = int_to_ptr.vmem [resolvable:$true] %s293_s26 }
  0x1c   : > { %p2902_p1 = scmp.ge.s32.totalorder %s4660_s10, 2  ;;  %p4273_p3 = scmp.lt.s32.totalorder %s4660_s10, 2 }
  0x1d   : > { %p4241_p2 = pneg %p4785_p0  ;;  %s319_s12 = sand.u32 1, %s4660_s10  }
  0x1e   : > { %p4802_p7 = pnand %p4273_p3, %p4755_p4  ;;  %s4807_s21 = sand.u32 1, %s4648_s29  }
  0x1f   : > { %s291_s23 = sshll.u32 %s5566_s0, 4  ;;  %p4796_p6 = pnand %p4241_p2, %p110_p5  ;;  %s292_s23 = int_to_ptr.hbm [resolvable:$true] %s291_s23 }
  0x20   : > { %s2903_s22 = sshll.u32 %s4807_s21, 11  ;;  %s3958_s25 = sshll.u32 %s4656_s9, 4 }
  0x21   : > { %4244 = dma.hbm_to_vmem [thread:$0]  (!%p4796_p6), %s292_s23, 1024, %s294_s26, [#allocation4]  }
  0x22   : > { %s323_s0 = scalar_lea.vmem [#allocation8], %s2903_s22  ;;  %s331_s15 = scalar_lea.hbm %s5536_s2, %s3958_s25 }
  0x23   : > { %s334_s13 = sshll.u32 %s323_s0, 4  ;;  %s332_s20 = sshll.u32 %s331_s15, 4  ;;  %s335_s13 = int_to_ptr.vmem [resolvable:$true] %s334_s13  ;;  %s333_s20 = int_to_ptr.hbm [resolvable:$true] %s332_s20 }
  0x24   : > { %s2906_s27 = sshll.u32 %s4807_s21, 5  ;;  %s4817_s29 = scalar_lea.sflag [#allocation4], %s319_s12 }
  0x25   : > { %s4663_s18 = smov 512   ;;  %s4664_s8 = smov 256  }
  0x26   : > { %s4665_s30 = smov 16   ;;  %s3959_s0 = sshll.u32 %s4656_s9, 5 }
  0x27   : > { %4251 = dma.hbm_to_vmem [thread:$0]  (!%p4802_p7), %s333_s20, 32768, %s335_s13, %s4817_s29, %s4663_s18, %s4664_s8, %s4665_s30  }
  0x28   : > { %s353_s19 = scalar_lea.hbm %s5537_s3, %s3959_s0  ;;  %s348_s26 = scalar_lea.vmem [#allocation9], %s2906_s27 }
  0x29   : > { %s357_s22 = sshll.u32 %s348_s26, 4  ;;  %s355_s25 = sshll.u32 %s353_s19, 4  ;;  %s358_s22 = int_to_ptr.vmem [resolvable:$true] %s357_s22  ;;  %s356_s25 = int_to_ptr.hbm [resolvable:$true] %s355_s25 }
  0x2a   : > { %4254 = dma.hbm_to_vmem [thread:$0]  (!%p4802_p7), %s356_s25, 512, %s358_s22, %s4817_s29  }
  0x2b   : > { %s373_s8 = scalar_lea.hbm %s5538_s4, %s3959_s0  ;;  %s368_s30 = scalar_lea.vmem [#allocation10], %s2906_s27 }
  0x2c   : > { %s377_s13 = sshll.u32 %s368_s30, 4  ;;  %s375_s18 = sshll.u32 %s373_s8, 4  ;;  %s378_s13 = int_to_ptr.vmem [resolvable:$true] %s377_s13  ;;  %s376_s18 = int_to_ptr.hbm [resolvable:$true] %s375_s18 }
  0x2d   : > { %4257 = dma.hbm_to_vmem [thread:$0]  (!%p4802_p7), %s376_s18, 512, %s378_s13, %s4817_s29  }
  0x2e   : > { %s393_s10 = scalar_lea.hbm %s5539_s5, %s3959_s0  ;;  %s388_s19 = scalar_lea.vmem [#allocation11], %s2906_s27 }
  0x2f   : > { %s397_s26 = sshll.u32 %s388_s19, 4  ;;  %s395_s22 = sshll.u32 %s393_s10, 4  ;;  %s398_s26 = int_to_ptr.vmem [resolvable:$true] %s397_s26  ;;  %s396_s22 = int_to_ptr.hbm [resolvable:$true] %s395_s22 }
  0x30   : > { %s2915_s25 = sshll.u32 %s4807_s21, 2  ;;  %s2916_s12 = sshll.u32 %s4656_s9, 2 }
  0x31   : > { %4260 = dma.hbm_to_vmem [thread:$0]  (!%p4802_p7), %s396_s22, 512, %s398_s26, %s4817_s29  }
  0x32   : > { %s412_s30 = scalar_lea.hbm %s5540_s6, %s2916_s12  ;;  %s408_s13 = scalar_lea.vmem [#allocation12], %s2915_s25 }
  0x33   : > { %s416_s18 = sshll.u32 %s408_s13, 4  ;;  %s414_s20 = sshll.u32 %s412_s30, 4  ;;  %s417_s18 = int_to_ptr.vmem [resolvable:$true] %s416_s18  ;;  %s415_s20 = int_to_ptr.hbm [resolvable:$true] %s414_s20 }
  0x34   : > { %s306_s23 = sshll.u32 %s5535_s1, 4  ;;  %s4666_s21 = smov [#allocation6]   ;;  %s307_s23 = int_to_ptr.hbm [resolvable:$true] %s306_s23 }
  0x35   : > { %4263 = dma.hbm_to_vmem [thread:$0]  (!%p4802_p7), %s415_s20, 64, %s417_s18, %s4817_s29  }
  0x36   : > { %s308_s10 = sshll.u32 %s4666_s21, 4  ;;  %s431_s22 = scalar_lea.hbm %s5541_s7, %s2916_s12  ;;  %s309_s10 = int_to_ptr.vmem [resolvable:$true] %s308_s10 }
  0x37   : > { %4247 = dma.hbm_to_vmem [thread:$0]  (!%p4796_p6), %s307_s23, 1024, %s309_s10, [#allocation7]  }
  0x38   : > { %s433_s15 = sshll.u32 %s431_s22, 4  ;;  %s427_s8 = scalar_lea.vmem [#allocation13], %s2915_s25  ;;  %s434_s15 = int_to_ptr.hbm [resolvable:$true] %s433_s15 }
  0x39   : > { %s435_s30 = sshll.u32 %s427_s8, 4  ;;  %444 = sbr.rel (%p4785_p0) target bundleno = 479 (0x1df), region = 52  ;;  %s436_s30 = int_to_ptr.vmem [resolvable:$true] %s435_s30 }
  0x3a   : > { %4266 = dma.hbm_to_vmem [thread:$0]  (!%p4802_p7), %s434_s15, 64, %s436_s30, %s4817_s29  }
  0x3e   : > { %4623 = dma.done.wait (%p110_p5), [#allocation4], 1024  }
  0x3f   : > { %4625 = vsyncadd (%p110_p5), [#allocation4], 4294966272 }
  0x40   : > { %4627 = dma.done.wait (%p110_p5), [#allocation7], 1024  }
  0x41   : > { %4629 = vsyncadd (%p110_p5), [#allocation7], 4294966272  ;;  %s456_s14 = sand.u32 1, %s4743_s11   ;;  %s4872_s29 = sand.u32 1, %s4644_s28  }
  0x42   : > { %s2922_s24 = sshll.u32 %s4872_s29, 11  ;;  %s457_s16 = scalar_lea.sflag [#allocation4], %s456_s14 }
  0x43   : > { %s4875_s25 = scalar_lea.vmem [#allocation8], %s2922_s24 }
  0x44   : > { %4631 = dma.done.wait (%p4765_p8), %s457_s16, 34432  }
  0x45   : > { %4633 = vsyncadd (%p4765_p8), %s457_s16, 4294932864  ;;  %v3043_v0 = vld [vmem:[%s4875_s25 + $0xe0] sm:$0xf]  ;;  %v3992_v1 = vld [vmem:[%s4875_s25 + $0xec] sm:$0xf0]  ;;  %s5318_s11 = sshll.u32 %s4872_s29, 5 }
  0x46   : > { %v3171_v2 = vld [vmem:[%s4875_s25 + $0x1e0] sm:$0xf]  ;;  %v3044_v3 = vor.u32 %v3992_v1, %v3043_v0  ;;  %v4024_v4 = vld [vmem:[%s4875_s25 + $0x1ec] sm:$0xf0]  ;;  %s2926_s17 = sshll.u32 %s4872_s29, 2  ;;  %s5349_s13 = scalar_lea.vmem [#allocation9], %s5318_s11 }
  0x47   : > { %v3299_v5 = vld [vmem:[%s4875_s25 + $0x2e0] sm:$0xf]  ;;  %v4056_v6 = vld [vmem:[%s4875_s25 + $0x2ec] sm:$0xf0]  ;;  %v3172_v7 = vor.u32 %v4024_v4, %v3171_v2  ;;  %s510_s12 = scalar_lea.vmem [#allocation13], %s2926_s17  ;;  %s5353_s18 = scalar_lea.vmem [#allocation10], %s5318_s11 }
  0x48   : > { %v3300_v8 = vor.u32 %v4056_v6, %v3299_v5  ;;  %v3427_v9 = vld [vmem:[%s4875_s25 + $0x3e0] sm:$0xf]  ;;  %v4088_v10 = vld [vmem:[%s4875_s25 + $0x3ec] sm:$0xf0]  ;;  %2175 = vmatpush.bf16.msra.mxu0 %v3044_v3  ;;  %s500_s20 = scalar_lea.vmem [#allocation12], %s2926_s17  ;;  %s5375_s27 = scalar_lea.vmem [#allocation11], %s5318_s11 }
  0x49   : > { %v3027_v11 = vld [vmem:[%s4875_s25 + $0xc0] sm:$0xf]  ;;  %v3428_v12 = vor.u32 %v4088_v10, %v3427_v9  ;;  %v3988_v13 = vld [vmem:[%s4875_s25 + $0xcc] sm:$0xf0]  ;;  %2188 = vmatpush.bf16.msra.mxu1 %v3172_v7  ;;  %s5404_s0 = scalar_lea.vmem [#allocation14], %s5318_s11  ;;  %s5570_s23 = sld [smem:[#allocation21_spill]] }
  0x4a   : > { %v3155_v14 = vld [vmem:[%s4875_s25 + $0x1c0] sm:$0xf]  ;;  %v4020_v15 = vld [vmem:[%s4875_s25 + $0x1cc] sm:$0xf0]  ;;  %2201 = vmatpush.bf16.msra.mxu2 %v3300_v8  ;;  %v3028_v16 = vor.u32 %v3988_v13, %v3027_v11  ;;  %s5571_s26 = sld [smem:[#allocation28_spill]]  ;;  %s2690_s8 = sshll.u32 %s5404_s0, 4  ;;  %s2691_s8 = int_to_ptr.vmem [resolvable:$true] %s2690_s8 }
  0x4b   : > { %v3156_v17 = vor.u32 %v4020_v15, %v3155_v14  ;;  %v3283_v18 = vld [vmem:[%s4875_s25 + $0x2c0] sm:$0xf]  ;;  %v4052_v19 = vld [vmem:[%s4875_s25 + $0x2cc] sm:$0xf0]  ;;  %2214 = vmatpush.bf16.msra.mxu3 %v3428_v12  ;;  %s2677_s14 = scalar_lea.sflag [#allocation5], %s4872_s29 }
  0x4c   : > { %v3411_v20 = vld [vmem:[%s4875_s25 + $0x3c0] sm:$0xf]  ;;  %v3284_v21 = vor.u32 %v4052_v19, %v3283_v18  ;;  %v4084_v22 = vld [vmem:[%s4875_s25 + $0x3cc] sm:$0xf0]  ;;  %2176 = vmatpush.bf16.msra.mxu0 %v3028_v16 }
  0x4d   : > { %v3011_v23 = vld [vmem:[%s4875_s25 + $0xa0] sm:$0xf]  ;;  %v3984_v24 = vld [vmem:[%s4875_s25 + $0xac] sm:$0xf0]  ;;  %v3412_v25 = vor.u32 %v4084_v22, %v3411_v20  ;;  %2189 = vmatpush.bf16.msra.mxu1 %v3156_v17 }
  0x4e   : > { %v3139_v26 = vld [vmem:[%s4875_s25 + $0x1a0] sm:$0xf]  ;;  %v4016_v27 = vld [vmem:[%s4875_s25 + $0x1ac] sm:$0xf0]  ;;  %v3012_v29 = vor.u32 %v3984_v24, %v3011_v23  ;;  %2202 = vmatpush.bf16.msra.mxu2 %v3284_v21 }
  0x4f   : > { %v3267_v28 = vld [vmem:[%s4875_s25 + $0x2a0] sm:$0xf]  ;;  %v4048_v30 = vld [vmem:[%s4875_s25 + $0x2ac] sm:$0xf0]  ;;  %v3140_v33 = vor.u32 %v4016_v27, %v3139_v26  ;;  %2215 = vmatpush.bf16.msra.mxu3 %v3412_v25  ;;  %s4218_s21 = sshll.u32 %s5570_s23, 5 }
  0x50   : > { %v3395_v31 = vld [vmem:[%s4875_s25 + $0x3a0] sm:$0xf]  ;;  %v4080_v32 = vld [vmem:[%s4875_s25 + $0x3ac] sm:$0xf0]  ;;  %v3268_v34 = vor.u32 %v4048_v30, %v3267_v28  ;;  %2177 = vmatpush.bf16.msra.mxu0 %v3012_v29  ;;  %s2688_s22 = scalar_lea.hbm %s5571_s26, %s4218_s21  ;;  %s4590_s17 = scalar_lea.hbm %s5571_s26, 64 }
  0x51   : > { %v2995_v35 = vld [vmem:[%s4875_s25 + $0x80] sm:$0xf]  ;;  %v3980_v36 = vld [vmem:[%s4875_s25 + $0x8c] sm:$0xf0]  ;;  %v3396_v38 = vor.u32 %v4080_v32, %v3395_v31  ;;  %2190 = vmatpush.bf16.msra.mxu1 %v3140_v33  ;;  %s2692_s30 = sshll.u32 %s2688_s22, 4  ;;  %s2693_s30 = int_to_ptr.hbm [resolvable:$true] %s2692_s30 }
  0x52   : > { %v3123_v37 = vld [vmem:[%s4875_s25 + $0x180] sm:$0xf]  ;;  %v4012_v39 = vld [vmem:[%s4875_s25 + $0x18c] sm:$0xf0]  ;;  %v2996_v44 = vor.u32 %v3980_v36, %v2995_v35  ;;  %2203 = vmatpush.bf16.msra.mxu2 %v3268_v34  ;;  %s4584_s24 = sshra.s32 %s2693_s30, 4  ;;  %s4585_s24 = int_to_ptr.hbm [resolvable:$true] %s4584_s24 }
  0x53   : > { %v3251_v40 = vld [vmem:[%s4875_s25 + $0x280] sm:$0xf]  ;;  %v4044_v41 = vld [vmem:[%s4875_s25 + $0x28c] sm:$0xf0]  ;;  %v3124_v45 = vor.u32 %v4012_v39, %v3123_v37  ;;  %2216 = vmatpush.bf16.msra.mxu3 %v3396_v38  ;;  %s4586_s16 = scalar_lea.hbm %s4585_s24, 32  ;;  %p4591_p10 = scmp.lt.s32.totalorder %s4585_s24, %s5571_s26 }
  0x54   : > { %v3379_v42 = vld [vmem:[%s4875_s25 + $0x380] sm:$0xf]  ;;  %v4076_v43 = vld [vmem:[%s4875_s25 + $0x38c] sm:$0xf0]  ;;  %v3252_v46 = vor.u32 %v4044_v41, %v3251_v40  ;;  %2178 = vmatpush.bf16.msra.mxu0 %v2996_v44  ;;  %p4587_p4 = scmp.ne.s32.totalorder %s4585_s24, %s4586_s16  ;;  %p4592_p12 = scmp.lt.s32.totalorder %s4590_s17, %s4586_s16 }
  0x55   : > { %v2979_v47 = vld [vmem:[%s4875_s25 + $0x60] sm:$0xf]  ;;  %v3976_v48 = vld [vmem:[%s4875_s25 + $0x6c] sm:$0xf0]  ;;  %v3380_v50 = vor.u32 %v4076_v43, %v3379_v42  ;;  %2191 = vmatpush.bf16.msra.mxu1 %v3124_v45 }
  0x56   : > { %v3107_v49 = vld [vmem:[%s4875_s25 + $0x160] sm:$0xf]  ;;  %v4008_v51 = vld [vmem:[%s4875_s25 + $0x16c] sm:$0xf0]  ;;  %v2980_v56 = vor.u32 %v3976_v48, %v2979_v47  ;;  %2204 = vmatpush.bf16.msra.mxu2 %v3252_v46  ;;  %p4588_p5 = pnand %p4587_p4, %p4769_p9  ;;  %p4593_p13 = por %p4592_p12, %p4591_p10 }
  0x57   : > { %v3235_v52 = vld [vmem:[%s4875_s25 + $0x260] sm:$0xf]  ;;  %v4040_v53 = vld [vmem:[%s4875_s25 + $0x26c] sm:$0xf0]  ;;  %v3108_v57 = vor.u32 %v4008_v51, %v3107_v49  ;;  %2217 = vmatpush.bf16.msra.mxu3 %v3380_v50 }
  0x58   : > { %v3363_v54 = vld [vmem:[%s4875_s25 + $0x360] sm:$0xf]  ;;  %v4072_v55 = vld [vmem:[%s4875_s25 + $0x36c] sm:$0xf0]  ;;  %v3236_v58 = vor.u32 %v4040_v53, %v3235_v52  ;;  %2179 = vmatpush.bf16.msra.mxu0 %v2980_v56  ;;  %p4589_p8 = pneg %p4588_p5 }
  0x59   : > { %v2963_v59 = vld [vmem:[%s4875_s25 + $0x40] sm:$0xf]  ;;  %v3972_v60 = vld [vmem:[%s4875_s25 + $0x4c] sm:$0xf0]  ;;  %v3364_v62 = vor.u32 %v4072_v55, %v3363_v54  ;;  %2192 = vmatpush.bf16.msra.mxu1 %v3108_v57 }
  0x5a   : > { %v3091_v61 = vld [vmem:[%s4875_s25 + $0x140] sm:$0xf]  ;;  %v4004_v63 = vld [vmem:[%s4875_s25 + $0x14c] sm:$0xf0]  ;;  %v2964_v4 = vor.u32 %v3972_v60, %v2963_v59  ;;  %2205 = vmatpush.bf16.msra.mxu2 %v3236_v58  ;;  %p4594_p0 = pnand %p4593_p13, %p4589_p8 }
  0x5b   : > { %v3219_v0 = vld [vmem:[%s4875_s25 + $0x240] sm:$0xf]  ;;  %v4036_v1 = vld [vmem:[%s4875_s25 + $0x24c] sm:$0xf0]  ;;  %v3092_v5 = vor.u32 %v4004_v63, %v3091_v61  ;;  %2218 = vmatpush.bf16.msra.mxu3 %v3364_v62 }
  0x5c   : > { %v3347_v2 = vld [vmem:[%s4875_s25 + $0x340] sm:$0xf]  ;;  %v4068_v3 = vld [vmem:[%s4875_s25 + $0x34c] sm:$0xf0]  ;;  %v3220_v6 = vor.u32 %v4036_v1, %v3219_v0  ;;  %2180 = vmatpush.bf16.msra.mxu0 %v2964_v4 }
  0x5d   : > { %v2947_v7 = vld [vmem:[%s4875_s25 + $0x20] sm:$0xf]  ;;  %v3968_v8 = vld [vmem:[%s4875_s25 + $0x2c] sm:$0xf0]  ;;  %v3348_v10 = vor.u32 %v4068_v3, %v3347_v2  ;;  %2193 = vmatpush.bf16.msra.mxu1 %v3092_v5 }
  0x5e   : > { %v3075_v9 = vld [vmem:[%s4875_s25 + $0x120] sm:$0xf]  ;;  %v4000_v11 = vld [vmem:[%s4875_s25 + $0x12c] sm:$0xf0]  ;;  %v2948_v16 = vor.u32 %v3968_v8, %v2947_v7  ;;  %2206 = vmatpush.bf16.msra.mxu2 %v3220_v6 }
  0x5f   : > { %v3203_v12 = vld [vmem:[%s4875_s25 + $0x220] sm:$0xf]  ;;  %v4032_v13 = vld [vmem:[%s4875_s25 + $0x22c] sm:$0xf0]  ;;  %v3076_v19 = vor.u32 %v4000_v11, %v3075_v9  ;;  %2219 = vmatpush.bf16.msra.mxu3 %v3348_v10 }
  0x60   : > { %v3331_v14 = vld [vmem:[%s4875_s25 + $0x320] sm:$0xf]  ;;  %v4064_v15 = vld [vmem:[%s4875_s25 + $0x32c] sm:$0xf0]  ;;  %v3204_v20 = vor.u32 %v4032_v13, %v3203_v12  ;;  %2181 = vmatpush.bf16.msra.mxu0 %v2948_v16 }
  0x61   : > { %v2931_v17 = vld [vmem:[%s4875_s25] sm:$0xf]  ;;  %v3964_v18 = vld [vmem:[%s4875_s25 + $0xc] sm:$0xf0]  ;;  %v3332_v24 = vor.u32 %v4064_v15, %v3331_v14  ;;  %2194 = vmatpush.bf16.msra.mxu1 %v3076_v19 }
  0x62   : > { %v3059_v21 = vld [vmem:[%s4875_s25 + $0x100] sm:$0xf]  ;;  %v3996_v22 = vld [vmem:[%s4875_s25 + $0x10c] sm:$0xf0]  ;;  %v2932_v31 = vor.u32 %v3964_v18, %v2931_v17  ;;  %2207 = vmatpush.bf16.msra.mxu2 %v3204_v20  ;;  %v590_v20 = vld [vmem:[#allocation3 + $0x18] sm:$0xff] }
  0x63   : > { %v3187_v23 = vld [vmem:[%s4875_s25 + $0x200] sm:$0xf]  ;;  %v4028_v25 = vld [vmem:[%s4875_s25 + $0x20c] sm:$0xf0]  ;;  %v3060_v35 = vor.u32 %v3996_v22, %v3059_v21  ;;  %2220 = vmatpush.bf16.msra.mxu3 %v3332_v24  ;;  %v606_v21 = vld [vmem:[#allocation6 + $0x18] sm:$0xff] }
  0x64   : > { %v3315_v26 = vld [vmem:[%s4875_s25 + $0x300] sm:$0xf]  ;;  %v4060_v27 = vld [vmem:[%s4875_s25 + $0x30c] sm:$0xf0]  ;;  %v3188_v36 = vor.u32 %v4028_v25, %v3187_v23  ;;  %2182 = vmatpush.bf16.msra.mxu0 %v2932_v31  ;;  %v598_v25 = vmul.f32 0.9471104, %v590_v20 }
  0x65   : > { %v3555_v28 = vld [vmem:[%s4875_s25 + $0x4e0] sm:$0xf]  ;;  %v4120_v29 = vld [vmem:[%s4875_s25 + $0x4ec] sm:$0xf0]  ;;  %v3316_v39 = vor.u32 %v4060_v27, %v3315_v26  ;;  %2195 = vmatpush.bf16.msra.mxu1 %v3060_v35  ;;  %v614_v26 = vmul.f32 0.32090786, %v606_v21 }
  0x66   : > { %v3683_v30 = vld [vmem:[%s4875_s25 + $0x5e0] sm:$0xf]  ;;  %v4152_v32 = vld [vmem:[%s4875_s25 + $0x5ec] sm:$0xf0]  ;;  %v3556_v40 = vor.u32 %v4120_v29, %v3555_v28  ;;  %2208 = vmatpush.bf16.msra.mxu2 %v3188_v36  ;;  %v588_v31 = vld [vmem:[#allocation3 + $0x8] sm:$0xff] }
  0x67   : > { %v3811_v33 = vld [vmem:[%s4875_s25 + $0x6e0] sm:$0xf]  ;;  %v4184_v34 = vld [vmem:[%s4875_s25 + $0x6ec] sm:$0xf0]  ;;  %v3684_v42 = vor.u32 %v4152_v32, %v3683_v30  ;;  %2221 = vmatpush.bf16.msra.mxu3 %v3316_v39  ;;  %v604_v32 = vld [vmem:[#allocation6 + $0x8] sm:$0xff]  ;;  %v622_v35 = vadd.f32 %v614_v26, %v598_v25 }
  0x68   : > { %v3939_v37 = vld [vmem:[%s4875_s25 + $0x7e0] sm:$0xf]  ;;  %v4216_v38 = vld [vmem:[%s4875_s25 + $0x7ec] sm:$0xf0]  ;;  %v3812_v43 = vor.u32 %v4184_v34, %v3811_v33  ;;  %2227 = vmatpush.bf16.msrb.mxu0 %v3556_v40  ;;  %v596_v36 = vmul.f32 0.9471104, %v588_v31 }
  0x69   : > { %v3539_v41 = vld [vmem:[%s4875_s25 + $0x4c0] sm:$0xf]  ;;  %v4116_v44 = vld [vmem:[%s4875_s25 + $0x4cc] sm:$0xf0]  ;;  %v3940_v47 = vor.u32 %v4216_v38, %v3939_v37  ;;  %2240 = vmatpush.bf16.msrb.mxu1 %v3684_v42  ;;  %v612_v37 = vmul.f32 0.32090786, %v604_v32 }
  0x6a   : > { %v3667_v45 = vld [vmem:[%s4875_s25 + $0x5c0] sm:$0xf]  ;;  %v4148_v46 = vld [vmem:[%s4875_s25 + $0x5cc] sm:$0xf0]  ;;  %v3540_v54 = vor.u32 %v4116_v44, %v3539_v41  ;;  %2253 = vmatpush.bf16.msrb.mxu2 %v3812_v43  ;;  %v594_v31 = vld [vmem:[#allocation3 + $0x38] sm:$0xff] }
  0x6b   : > { %v3795_v48 = vld [vmem:[%s4875_s25 + $0x6c0] sm:$0xf]  ;;  %v4180_v49 = vld [vmem:[%s4875_s25 + $0x6cc] sm:$0xf0]  ;;  %v3668_v58 = vor.u32 %v4148_v46, %v3667_v45  ;;  %2266 = vmatpush.bf16.msrb.mxu3 %v3940_v47  ;;  %v4990_v45 = vpack.c.bf16 %v622_v35, %v622_v35  ;;  %v620_v46 = vadd.f32 %v612_v37, %v596_v36  ;;  %v610_v32 = vld [vmem:[#allocation6 + $0x38] sm:$0xff] }
  0x6c   : > { %v3923_v50 = vld [vmem:[%s4875_s25 + $0x7c0] sm:$0xf]  ;;  %v4212_v51 = vld [vmem:[%s4875_s25 + $0x7cc] sm:$0xf0]  ;;  %v3796_v59 = vor.u32 %v4180_v49, %v3795_v48  ;;  %2228 = vmatpush.bf16.msrb.mxu0 %v3540_v54  ;;  %v618_v35 = vmul.f32 0.32090786, %v610_v32 }
  0x6d   : > { %v3523_v52 = vld [vmem:[%s4875_s25 + $0x4a0] sm:$0xf]  ;;  %v4112_v53 = vld [vmem:[%s4875_s25 + $0x4ac] sm:$0xf0]  ;;  %v3924_v63 = vor.u32 %v4212_v51, %v3923_v50  ;;  %2241 = vmatpush.bf16.msrb.mxu1 %v3668_v58  ;;  %2222 = vmatmul.bf16.vlgmr.msra.gmra.mxu3 %v4990_v45  ;;  %v3381_v32 = vld [vmem:[%s4875_s25 + $0x390] sm:$0xf0] }
  0x6e   : > { %v3651_v55 = vld [vmem:[%s4875_s25 + $0x5a0] sm:$0xf]  ;;  %v4144_v56 = vld [vmem:[%s4875_s25 + $0x5ac] sm:$0xf0]  ;;  %v3524_v8 = vor.u32 %v4112_v53, %v3523_v52  ;;  %2254 = vmatpush.bf16.msrb.mxu2 %v3796_v59  ;;  %v4995_v53 = vpack.c.bf16 %v620_v46, %v620_v46  ;;  %v3429_v46 = vld [vmem:[%s4875_s25 + $0x3f0] sm:$0xf0] }
  0x6f   : > { %v3779_v57 = vld [vmem:[%s4875_s25 + $0x6a0] sm:$0xf]  ;;  %v4176_v60 = vld [vmem:[%s4875_s25 + $0x6ac] sm:$0xf0]  ;;  %v3652_v12 = vor.u32 %v4144_v56, %v3651_v55  ;;  %2267 = vmatpush.bf16.msrb.mxu3 %v3924_v63 }
  0x70   : > { %v3907_v61 = vld [vmem:[%s4875_s25 + $0x7a0] sm:$0xf]  ;;  %v589_v62 = vld [vmem:[#allocation3 + $0x10] sm:$0xff]  ;;  %v3780_v13 = vor.u32 %v4176_v60, %v3779_v57  ;;  %2229 = vmatpush.bf16.msrb.mxu0 %v3524_v8  ;;  %2196 = vmatmul.bf16.vlgmr.msra.gmra.mxu1 %v4995_v53 }
  0x71   : > { %v4208_v0 = vld [vmem:[%s4875_s25 + $0x7ac] sm:$0xf0]  ;;  %v597_v1 = vmul.f32 0.9471104, %v589_v62  ;;  %v587_v3 = vld [vmem:[#allocation3] sm:$0xff]  ;;  %2242 = vmatpush.bf16.msrb.mxu1 %v3652_v12 }
  0x72   : > { %v605_v2 = vld [vmem:[#allocation6 + $0x10] sm:$0xff]  ;;  %v3507_v4 = vld [vmem:[%s4875_s25 + $0x480] sm:$0xf]  ;;  %v595_v17 = vmul.f32 0.9471104, %v587_v3  ;;  %v3908_v18 = vor.u32 %v4208_v0, %v3907_v61  ;;  %2255 = vmatpush.bf16.msrb.mxu2 %v3780_v13 }
  0x73   : > { %v4108_v5 = vld [vmem:[%s4875_s25 + $0x48c] sm:$0xf0]  ;;  %v3635_v6 = vld [vmem:[%s4875_s25 + $0x580] sm:$0xf]  ;;  %v613_v7 = vmul.f32 0.32090786, %v605_v2 }
  0x74   : > { %v4140_v9 = vld [vmem:[%s4875_s25 + $0x58c] sm:$0xf0]  ;;  %v3763_v10 = vld [vmem:[%s4875_s25 + $0x680] sm:$0xf]  ;;  %v3508_v27 = vor.u32 %v4108_v5, %v3507_v4  ;;  %2268 = vmatpush.bf16.msrb.mxu3 %v3908_v18 }
  0x75   : > { %v4172_v11 = vld [vmem:[%s4875_s25 + $0x68c] sm:$0xf0]  ;;  %v3891_v14 = vld [vmem:[%s4875_s25 + $0x780] sm:$0xf]  ;;  %v621_v16 = vadd.f32 %v613_v7, %v597_v1  ;;  %v3636_v28 = vor.u32 %v4140_v9, %v3635_v6 }
  0x76   : > { %v4204_v15 = vld [vmem:[%s4875_s25 + $0x78c] sm:$0xf0]  ;;  %v603_v19 = vld [vmem:[#allocation6] sm:$0xff]  ;;  %v3764_v29 = vor.u32 %v4172_v11, %v3763_v10  ;;  %2230 = vmatpush.bf16.msrb.mxu0 %v3508_v27 }
  0x77   : > { %v3491_v22 = vld [vmem:[%s4875_s25 + $0x460] sm:$0xf]  ;;  %v4978_v23 = vpack.c.bf16 %v621_v16, %v621_v16  ;;  %v611_v24 = vmul.f32 0.32090786, %v603_v19  ;;  %v4104_v30 = vld [vmem:[%s4875_s25 + $0x46c] sm:$0xf0]  ;;  %v3892_v38 = vor.u32 %v4204_v15, %v3891_v14  ;;  %2243 = vmatpush.bf16.msrb.mxu1 %v3636_v28 }
  0x78   : > { %v3619_v33 = vld [vmem:[%s4875_s25 + $0x560] sm:$0xf]  ;;  %v4136_v39 = vld [vmem:[%s4875_s25 + $0x56c] sm:$0xf0]  ;;  %v3492_v47 = vor.u32 %v4104_v30, %v3491_v22  ;;  %2256 = vmatpush.bf16.msrb.mxu2 %v3764_v29  ;;  %v3990_v22 = vld [vmem:[%s4875_s25 + $0xe4] sm:$0xf] }
  0x79   : > { %v619_v34 = vadd.f32 %v611_v24, %v595_v17  ;;  %v3747_v40 = vld [vmem:[%s4875_s25 + $0x660] sm:$0xf]  ;;  %v4168_v41 = vld [vmem:[%s4875_s25 + $0x66c] sm:$0xf0]  ;;  %2209 = vmatmul.bf16.vlgmr.msra.gmra.mxu2 %v4978_v23  ;;  %v3620_v48 = vor.u32 %v4136_v39, %v3619_v33  ;;  %2269 = vmatpush.bf16.msrb.mxu3 %v3892_v38  ;;  %v3045_v24 = vld [vmem:[%s4875_s25 + $0xf0] sm:$0xf0] }
  0x7a   : > { %v3875_v42 = vld [vmem:[%s4875_s25 + $0x760] sm:$0xf]  ;;  %v4200_v43 = vld [vmem:[%s4875_s25 + $0x76c] sm:$0xf0]  ;;  %v3748_v49 = vor.u32 %v4168_v41, %v3747_v40  ;;  %2231 = vmatpush.bf16.msrb.mxu0 %v3492_v47  ;;  %v4022_v29 = vld [vmem:[%s4875_s25 + $0x1e4] sm:$0xf] }
  0x7b   : > { %v4988_v44 = vpack.c.bf16 %v619_v34, %v619_v34  ;;  %v3475_v50 = vld [vmem:[%s4875_s25 + $0x440] sm:$0xf]  ;;  %v4100_v51 = vld [vmem:[%s4875_s25 + $0x44c] sm:$0xf0]  ;;  %v3876_v54 = vor.u32 %v4200_v43, %v3875_v42  ;;  %2244 = vmatpush.bf16.msrb.mxu1 %v3620_v48  ;;  %v602_v34 = vmul.f32 0.9471104, %v594_v31 }
  0x7c   : > { %v3603_v52 = vld [vmem:[%s4875_s25 + $0x540] sm:$0xf]  ;;  %v4132_v55 = vld [vmem:[%s4875_s25 + $0x54c] sm:$0xf0]  ;;  %v3476_v60 = vor.u32 %v4100_v51, %v3475_v50  ;;  %2257 = vmatpush.bf16.msrb.mxu2 %v3748_v49  ;;  %v3173_v38 = vld [vmem:[%s4875_s25 + $0x1f0] sm:$0xf0]  ;;  %v3048_v51 = vor.u32 %v3990_v22, %v3045_v24 }
  0x7d   : > { %v3731_v56 = vld [vmem:[%s4875_s25 + $0x640] sm:$0xf]  ;;  %v4164_v57 = vld [vmem:[%s4875_s25 + $0x64c] sm:$0xf0]  ;;  %2183 = vmatmul.bf16.vlgmr.msra.gmra.mxu0 %v4988_v44  ;;  %v3604_v63 = vor.u32 %v4132_v55, %v3603_v52  ;;  %2270 = vmatpush.bf16.msrb.mxu3 %v3876_v54  ;;  %v4054_v39 = vld [vmem:[%s4875_s25 + $0x2e4] sm:$0xf]  ;;  %v626_v49 = vadd.f32 %v618_v35, %v602_v34 }
  0x7e   : > { %v3859_v58 = vld [vmem:[%s4875_s25 + $0x740] sm:$0xf]  ;;  %v4196_v59 = vld [vmem:[%s4875_s25 + $0x74c] sm:$0xf0]  ;;  %v3732_v0 = vor.u32 %v4164_v57, %v3731_v56  ;;  %2232 = vmatpush.bf16.msrb.mxu0 %v3476_v60  ;;  %v3301_v40 = vld [vmem:[%s4875_s25 + $0x2f0] sm:$0xf0]  ;;  %v3176_v56 = vor.u32 %v4022_v29, %v3173_v38 }
  0x7f   : > { %v3459_v61 = vld [vmem:[%s4875_s25 + $0x420] sm:$0xf]  ;;  %v4096_v62 = vld [vmem:[%s4875_s25 + $0x42c] sm:$0xf0]  ;;  %v3860_v4 = vor.u32 %v4196_v59, %v3859_v58  ;;  %2245 = vmatpush.bf16.msrb.mxu1 %v3604_v63  ;;  %v4086_v43 = vld [vmem:[%s4875_s25 + $0x3e4] sm:$0xf]  ;;  %v3304_v57 = vor.u32 %v4054_v39, %v3301_v40 }
  0x80   : > { %v3587_v1 = vld [vmem:[%s4875_s25 + $0x520] sm:$0xf]  ;;  %v4128_v2 = vld [vmem:[%s4875_s25 + $0x52c] sm:$0xf0]  ;;  %v3460_v12 = vor.u32 %v4096_v62, %v3459_v61  ;;  %2258 = vmatpush.bf16.msrb.mxu2 %v3732_v0  ;;  %v3986_v47 = vld [vmem:[%s4875_s25 + $0xc4] sm:$0xf]  ;;  %v3432_v61 = vor.u32 %v4086_v43, %v3429_v46 }
  0x81   : > { %v3715_v3 = vld [vmem:[%s4875_s25 + $0x620] sm:$0xf]  ;;  %v4160_v5 = vld [vmem:[%s4875_s25 + $0x62c] sm:$0xf0]  ;;  %v3588_v13 = vor.u32 %v4128_v2, %v3587_v1  ;;  %2271 = vmatpush.bf16.msrb.mxu3 %v3860_v4  ;;  %v3029_v52 = vld [vmem:[%s4875_s25 + $0xd0] sm:$0xf0] }
  0x82   : > { %v3843_v6 = vld [vmem:[%s4875_s25 + $0x720] sm:$0xf]  ;;  %v4192_v7 = vld [vmem:[%s4875_s25 + $0x72c] sm:$0xf0]  ;;  %v3716_v19 = vor.u32 %v4160_v5, %v3715_v3  ;;  %2233 = vmatpush.bf16.msrb.mxu0 %v3460_v12  ;;  %v4018_v54 = vld [vmem:[%s4875_s25 + $0x1c4] sm:$0xf]  ;;  %v5041_v5 = vpack.c.bf16 %v626_v49, %v626_v49 }
  0x83   : > { %v3443_v8 = vld [vmem:[%s4875_s25 + $0x400] sm:$0xf]  ;;  %v4092_v9 = vld [vmem:[%s4875_s25 + $0x40c] sm:$0xf0]  ;;  %v3844_v28 = vor.u32 %v4192_v7, %v3843_v6  ;;  %2246 = vmatpush.bf16.msrb.mxu1 %v3588_v13  ;;  %v592_v55 = vld [vmem:[#allocation3 + $0x28] sm:$0xff]  ;;  %v3032_v6 = vor.u32 %v3986_v47, %v3029_v52 }
  0x84   : > { %v3571_v10 = vld [vmem:[%s4875_s25 + $0x500] sm:$0xf]  ;;  %v4124_v11 = vld [vmem:[%s4875_s25 + $0x50c] sm:$0xf0]  ;;  %v3444_v36 = vor.u32 %v4092_v9, %v3443_v8  ;;  %2259 = vmatpush.bf16.msrb.mxu2 %v3716_v19  ;;  %v3157_v58 = vld [vmem:[%s4875_s25 + $0x1d0] sm:$0xf0] }
  0x85   : > { %v3699_v14 = vld [vmem:[%s4875_s25 + $0x600] sm:$0xf]  ;;  %v4156_v15 = vld [vmem:[%s4875_s25 + $0x60c] sm:$0xf0]  ;;  %v3572_v37 = vor.u32 %v4124_v11, %v3571_v10  ;;  %2272 = vmatpush.bf16.msrb.mxu3 %v3844_v28  ;;  %v600_v59 = vmul.f32 0.9471104, %v592_v55  ;;  %v3160_v8 = vor.u32 %v4018_v54, %v3157_v58 }
  0x86   : > { %v593_v16 = vld [vmem:[#allocation3 + $0x30] sm:$0xff]  ;;  %v591_v18 = vld [vmem:[#allocation3 + $0x20] sm:$0xff]  ;;  %v3700_v42 = vor.u32 %v4156_v15, %v3699_v14  ;;  %v608_v60 = vld [vmem:[#allocation6 + $0x28] sm:$0xff]  ;;  %2234 = vmatpush.bf16.msrb.mxu0 %v3444_v36 }
  0x87   : > { %v609_v17 = vld [vmem:[#allocation6 + $0x30] sm:$0xff]  ;;  %v3827_v20 = vld [vmem:[%s4875_s25 + $0x700] sm:$0xf]  ;;  %v601_v25 = vmul.f32 0.9471104, %v593_v16  ;;  %2247 = vmatpush.bf16.msrb.mxu1 %v3572_v37 }
  0x88   : > { %v4188_v21 = vld [vmem:[%s4875_s25 + $0x70c] sm:$0xf0]  ;;  %v617_v26 = vmul.f32 0.32090786, %v609_v17  ;;  %v599_v27 = vmul.f32 0.9471104, %v591_v18  ;;  %2260 = vmatpush.bf16.msrb.mxu2 %v3700_v42 }
  0x89   : > { %v607_v30 = vld [vmem:[#allocation6 + $0x20] sm:$0xff]  ;;  %v3828_v50 = vor.u32 %v4188_v21, %v3827_v20  ;;  %v3285_v63 = vld [vmem:[%s4875_s25 + $0x2d0] sm:$0xf0]  ;;  %v616_v1 = vmul.f32 0.32090786, %v608_v60 }
  0x8a   : > { %v615_v33 = vmul.f32 0.32090786, %v607_v30  ;;  %v625_v41 = vadd.f32 %v617_v26, %v601_v25  ;;  %v4050_v62 = vld [vmem:[%s4875_s25 + $0x2c4] sm:$0xf]  ;;  %v3413_v3 = vld [vmem:[%s4875_s25 + $0x3d0] sm:$0xf0]  ;;  %2279 = vmatpush.bf16.msra.mxu0 %v3048_v51 }
  0x8b   : > { %v4082_v2 = vld [vmem:[%s4875_s25 + $0x3c4] sm:$0xf]  ;;  %2273 = vmatpush.bf16.msrb.mxu3 %v3828_v50  ;;  %v624_v7 = vadd.f32 %v616_v1, %v600_v59  ;;  %2292 = vmatpush.bf16.msra.mxu1 %v3176_v56  ;;  %v3288_v9 = vor.u32 %v4050_v62, %v3285_v63  ;;  %v3013_v11 = vld [vmem:[%s4875_s25 + $0xb0] sm:$0xf0] }
  0x8c   : > { %v623_v48 = vadd.f32 %v615_v33, %v599_v27  ;;  %v5035_v0 = vpack.c.bf16 %v625_v41, %v625_v41  ;;  %2305 = vmatpush.bf16.msra.mxu2 %v3304_v57  ;;  %v3982_v10 = vld [vmem:[%s4875_s25 + $0xa4] sm:$0xf]  ;;  %v3416_v13 = vor.u32 %v4082_v2, %v3413_v3  ;;  %v3141_v14 = vld [vmem:[%s4875_s25 + $0x1b0] sm:$0xf0] }
  0x8d   : > { %v4014_v12 = vld [vmem:[%s4875_s25 + $0x1a4] sm:$0xf]  ;;  %v3269_v16 = vld [vmem:[%s4875_s25 + $0x2b0] sm:$0xf0]  ;;  %v5050_v17 = vpack.c.bf16 %v624_v7, %v624_v7  ;;  %v3016_v20 = vor.u32 %v3982_v10, %v3013_v11 }
  0x8e   : > { %v5039_v4 = vpack.c.bf16 %v623_v48, %v623_v48  ;;  %2261 = vmatmul.bf16.vlgmr.msrb.gmra.mxu2 %v5035_v0  ;;  %v4046_v15 = vld [vmem:[%s4875_s25 + $0x2a4] sm:$0xf]  ;;  %2274 = vmatmul.bf16.vlgmr.msrb.gmra.mxu3 %v5041_v5  ;;  %v3397_v19 = vld [vmem:[%s4875_s25 + $0x3b0] sm:$0xf0]  ;;  %v3144_v21 = vor.u32 %v4014_v12, %v3141_v14 }
  0x8f   : > { %2318 = vmatpush.bf16.msra.mxu3 %v3432_v61  ;;  %v4078_v18 = vld [vmem:[%s4875_s25 + $0x3a4] sm:$0xf]  ;;  %2280 = vmatpush.bf16.msra.mxu0 %v3032_v6  ;;  %v3272_v22 = vor.u32 %v4046_v15, %v3269_v16  ;;  %v2997_v25 = vld [vmem:[%s4875_s25 + $0x90] sm:$0xf0] }
  0x90   : > { %2235 = vmatmul.bf16.vlgmr.msrb.gmra.mxu0 %v5039_v4  ;;  %2248 = vmatmul.bf16.vlgmr.msrb.gmra.mxu1 %v5050_v17  ;;  %v3978_v24 = vld [vmem:[%s4875_s25 + $0x84] sm:$0xf]  ;;  %v3400_v27 = vor.u32 %v4078_v18, %v3397_v19  ;;  %v3125_v28 = vld [vmem:[%s4875_s25 + $0x190] sm:$0xf0] }
  0x91   : > { %2293 = vmatpush.bf16.msra.mxu1 %v3160_v8  ;;  %2306 = vmatpush.bf16.msra.mxu2 %v3288_v9  ;;  %v4010_v26 = vld [vmem:[%s4875_s25 + $0x184] sm:$0xf]  ;;  %v3253_v30 = vld [vmem:[%s4875_s25 + $0x290] sm:$0xf0]  ;;  %v3000_v33 = vor.u32 %v3978_v24, %v2997_v25 }
  0x92   : > { %v4042_v29 = vld [vmem:[%s4875_s25 + $0x284] sm:$0xf]  ;;  %v3128_v34 = vor.u32 %v4010_v26, %v3125_v28  ;;  %v2981_v37 = vld [vmem:[%s4875_s25 + $0x70] sm:$0xf0] }
  0x93   : > { %2319 = vmatpush.bf16.msra.mxu3 %v3416_v13  ;;  %v4074_v31 = vld [vmem:[%s4875_s25 + $0x384] sm:$0xf]  ;;  %2281 = vmatpush.bf16.msra.mxu0 %v3016_v20  ;;  %v3256_v35 = vor.u32 %v4042_v29, %v3253_v30  ;;  %v3109_v40 = vld [vmem:[%s4875_s25 + $0x170] sm:$0xf0] }
  0x94   : > { %v3974_v36 = vld [vmem:[%s4875_s25 + $0x64] sm:$0xf]  ;;  %v3384_v39 = vor.u32 %v4074_v31, %v3381_v32  ;;  %v3237_v42 = vld [vmem:[%s4875_s25 + $0x270] sm:$0xf0] }
  0x95   : > { %2294 = vmatpush.bf16.msra.mxu1 %v3144_v21  ;;  %2307 = vmatpush.bf16.msra.mxu2 %v3272_v22  ;;  %v4006_v38 = vld [vmem:[%s4875_s25 + $0x164] sm:$0xf]  ;;  %v3365_v46 = vld [vmem:[%s4875_s25 + $0x370] sm:$0xf0]  ;;  %v2984_v47 = vor.u32 %v3974_v36, %v2981_v37 }
  0x96   : > { %v4038_v41 = vld [vmem:[%s4875_s25 + $0x264] sm:$0xf]  ;;  %v3112_v48 = vor.u32 %v4006_v38, %v3109_v40  ;;  %v2965_v51 = vld [vmem:[%s4875_s25 + $0x50] sm:$0xf0] }
  0x97   : > { %2320 = vmatpush.bf16.msra.mxu3 %v3400_v27  ;;  %v4070_v43 = vld [vmem:[%s4875_s25 + $0x364] sm:$0xf]  ;;  %2282 = vmatpush.bf16.msra.mxu0 %v3000_v33  ;;  %v3240_v49 = vor.u32 %v4038_v41, %v3237_v42  ;;  %v3093_v55 = vld [vmem:[%s4875_s25 + $0x150] sm:$0xf0] }
  0x98   : > { %v3970_v50 = vld [vmem:[%s4875_s25 + $0x44] sm:$0xf]  ;;  %v3368_v54 = vor.u32 %v4070_v43, %v3365_v46  ;;  %v3221_v57 = vld [vmem:[%s4875_s25 + $0x250] sm:$0xf0] }
  0x99   : > { %2295 = vmatpush.bf16.msra.mxu1 %v3128_v34  ;;  %2308 = vmatpush.bf16.msra.mxu2 %v3256_v35  ;;  %v4002_v52 = vld [vmem:[%s4875_s25 + $0x144] sm:$0xf]  ;;  %v3349_v59 = vld [vmem:[%s4875_s25 + $0x350] sm:$0xf0]  ;;  %v2968_v60 = vor.u32 %v3970_v50, %v2965_v51 }
  0x9a   : > { %v4034_v56 = vld [vmem:[%s4875_s25 + $0x244] sm:$0xf]  ;;  %v3096_v61 = vor.u32 %v4002_v52, %v3093_v55  ;;  %v2949_v1 = vld [vmem:[%s4875_s25 + $0x30] sm:$0xf0] }
  0x9b   : > { %2321 = vmatpush.bf16.msra.mxu3 %v3384_v39  ;;  %v4066_v58 = vld [vmem:[%s4875_s25 + $0x344] sm:$0xf]  ;;  %2283 = vmatpush.bf16.msra.mxu0 %v2984_v47  ;;  %v3224_v62 = vor.u32 %v4034_v56, %v3221_v57  ;;  %v3077_v6 = vld [vmem:[%s4875_s25 + $0x130] sm:$0xf0] }
  0x9c   : > { %v3966_v63 = vld [vmem:[%s4875_s25 + $0x24] sm:$0xf]  ;;  %v3352_v3 = vor.u32 %v4066_v58, %v3349_v59  ;;  %v3205_v8 = vld [vmem:[%s4875_s25 + $0x230] sm:$0xf0] }
  0x9d   : > { %2296 = vmatpush.bf16.msra.mxu1 %v3112_v48  ;;  %2309 = vmatpush.bf16.msra.mxu2 %v3240_v49  ;;  %v3998_v2 = vld [vmem:[%s4875_s25 + $0x124] sm:$0xf]  ;;  %v3333_v10 = vld [vmem:[%s4875_s25 + $0x330] sm:$0xf0]  ;;  %v2952_v11 = vor.u32 %v3966_v63, %v2949_v1 }
  0x9e   : > { %v4030_v7 = vld [vmem:[%s4875_s25 + $0x224] sm:$0xf]  ;;  %v2933_v13 = vld [vmem:[%s4875_s25 + $0x10] sm:$0xf0]  ;;  %v3080_v14 = vor.u32 %v3998_v2, %v3077_v6 }
  0x9f   : > { %2322 = vmatpush.bf16.msra.mxu3 %v3368_v54  ;;  %v4062_v9 = vld [vmem:[%s4875_s25 + $0x324] sm:$0xf]  ;;  %2284 = vmatpush.bf16.msra.mxu0 %v2968_v60  ;;  %v3208_v15 = vor.u32 %v4030_v7, %v3205_v8  ;;  %v3061_v18 = vld [vmem:[%s4875_s25 + $0x110] sm:$0xf0] }
  0xa0   : > { %v3962_v12 = vld [vmem:[%s4875_s25 + $0x4] sm:$0xf]  ;;  %v3336_v20 = vor.u32 %v4062_v9, %v3333_v10  ;;  %v3189_v21 = vld [vmem:[%s4875_s25 + $0x210] sm:$0xf0] }
  0xa1   : > { %2297 = vmatpush.bf16.msra.mxu1 %v3096_v61  ;;  %2310 = vmatpush.bf16.msra.mxu2 %v3224_v62  ;;  %v3994_v16 = vld [vmem:[%s4875_s25 + $0x104] sm:$0xf]  ;;  %v3317_v24 = vld [vmem:[%s4875_s25 + $0x310] sm:$0xf0]  ;;  %v2936_v28 = vor.u32 %v3962_v12, %v2933_v13 }
  0xa2   : > { %v4026_v19 = vld [vmem:[%s4875_s25 + $0x204] sm:$0xf]  ;;  %v3557_v26 = vld [vmem:[%s4875_s25 + $0x4f0] sm:$0xf0]  ;;  %v3064_v32 = vor.u32 %v3994_v16, %v3061_v18 }
  0xa3   : > { %2323 = vmatpush.bf16.msra.mxu3 %v3352_v3  ;;  %v4058_v22 = vld [vmem:[%s4875_s25 + $0x304] sm:$0xf]  ;;  %2285 = vmatpush.bf16.msra.mxu0 %v2952_v11  ;;  %v3685_v29 = vld [vmem:[%s4875_s25 + $0x5f0] sm:$0xf0]  ;;  %v3192_v33 = vor.u32 %v4026_v19, %v3189_v21 }
  0xa4   : > { %v4118_v25 = vld [vmem:[%s4875_s25 + $0x4e4] sm:$0xf]  ;;  %v3813_v31 = vld [vmem:[%s4875_s25 + $0x6f0] sm:$0xf0]  ;;  %v3320_v36 = vor.u32 %v4058_v22, %v3317_v24 }
  0xa5   : > { %v4150_v27 = vld [vmem:[%s4875_s25 + $0x5e4] sm:$0xf]  ;;  %2298 = vmatpush.bf16.msra.mxu1 %v3080_v14  ;;  %2311 = vmatpush.bf16.msra.mxu2 %v3208_v15  ;;  %v3941_v35 = vld [vmem:[%s4875_s25 + $0x7f0] sm:$0xf0]  ;;  %v3560_v37 = vor.u32 %v4118_v25, %v3557_v26 }
  0xa6   : > { %v4182_v30 = vld [vmem:[%s4875_s25 + $0x6e4] sm:$0xf]  ;;  %v3688_v38 = vor.u32 %v4150_v27, %v3685_v29  ;;  %v3541_v41 = vld [vmem:[%s4875_s25 + $0x4d0] sm:$0xf0] }
  0xa7   : > { %v4214_v34 = vld [vmem:[%s4875_s25 + $0x7e4] sm:$0xf]  ;;  %2324 = vmatpush.bf16.msra.mxu3 %v3336_v20  ;;  %v3816_v39 = vor.u32 %v4182_v30, %v3813_v31  ;;  %2286 = vmatpush.bf16.msra.mxu0 %v2936_v28  ;;  %v3669_v46 = vld [vmem:[%s4875_s25 + $0x5d0] sm:$0xf0] }
  0xa8   : > { %v4114_v40 = vld [vmem:[%s4875_s25 + $0x4c4] sm:$0xf]  ;;  %v3944_v43 = vor.u32 %v4214_v34, %v3941_v35  ;;  %v3797_v48 = vld [vmem:[%s4875_s25 + $0x6d0] sm:$0xf0] }
  0xa9   : > { %v4146_v42 = vld [vmem:[%s4875_s25 + $0x5c4] sm:$0xf]  ;;  %2299 = vmatpush.bf16.msra.mxu1 %v3064_v32  ;;  %2312 = vmatpush.bf16.msra.mxu2 %v3192_v33  ;;  %v3925_v50 = vld [vmem:[%s4875_s25 + $0x7d0] sm:$0xf0]  ;;  %v3544_v51 = vor.u32 %v4114_v40, %v3541_v41 }
  0xaa   : > { %v4178_v47 = vld [vmem:[%s4875_s25 + $0x6c4] sm:$0xf]  ;;  %v3672_v52 = vor.u32 %v4146_v42, %v3669_v46  ;;  %v3525_v56 = vld [vmem:[%s4875_s25 + $0x4b0] sm:$0xf0]  ;;  %2287 = vmatmul.bf16.vlgmr.msra.gmra.mxu0 %v4988_v44 }
  0xab   : > { %v4210_v49 = vld [vmem:[%s4875_s25 + $0x7c4] sm:$0xf]  ;;  %2325 = vmatpush.bf16.msra.mxu3 %v3320_v36  ;;  %2331 = vmatpush.bf16.msrb.mxu0 %v3560_v37  ;;  %v3800_v54 = vor.u32 %v4178_v47, %v3797_v48  ;;  %v3653_v59 = vld [vmem:[%s4875_s25 + $0x5b0] sm:$0xf0] }
  0xac   : > { %v4110_v55 = vld [vmem:[%s4875_s25 + $0x4a4] sm:$0xf]  ;;  %v3928_v58 = vor.u32 %v4210_v49, %v3925_v50  ;;  %v3781_v61 = vld [vmem:[%s4875_s25 + $0x6b0] sm:$0xf0]  ;;  %2313 = vmatmul.bf16.vlgmr.msra.gmra.mxu2 %v4978_v23  ;;  %2300 = vmatmul.bf16.vlgmr.msra.gmra.mxu1 %v4995_v53 }
  0xad   : > { %2344 = vmatpush.bf16.msrb.mxu1 %v3688_v38  ;;  %2357 = vmatpush.bf16.msrb.mxu2 %v3816_v39  ;;  %v4142_v57 = vld [vmem:[%s4875_s25 + $0x5a4] sm:$0xf]  ;;  %v3909_v63 = vld [vmem:[%s4875_s25 + $0x7b0] sm:$0xf0]  ;;  %v3528_v1 = vor.u32 %v4110_v55, %v3525_v56 }
  0xae   : > { %v4174_v60 = vld [vmem:[%s4875_s25 + $0x6a4] sm:$0xf]  ;;  %2326 = vmatmul.bf16.vlgmr.msra.gmra.mxu3 %v4990_v45  ;;  %v3656_v2 = vor.u32 %v4142_v57, %v3653_v59  ;;  %v3509_v7 = vld [vmem:[%s4875_s25 + $0x490] sm:$0xf0] }
  0xaf   : > { %2370 = vmatpush.bf16.msrb.mxu3 %v3944_v43  ;;  %v4206_v62 = vld [vmem:[%s4875_s25 + $0x7a4] sm:$0xf]  ;;  %2332 = vmatpush.bf16.msrb.mxu0 %v3544_v51  ;;  %v3784_v3 = vor.u32 %v4174_v60, %v3781_v61  ;;  %v3637_v10 = vld [vmem:[%s4875_s25 + $0x590] sm:$0xf0] }
  0xb0   : > { %v4106_v6 = vld [vmem:[%s4875_s25 + $0x484] sm:$0xf]  ;;  %v3912_v9 = vor.u32 %v4206_v62, %v3909_v63  ;;  %v3765_v12 = vld [vmem:[%s4875_s25 + $0x690] sm:$0xf0] }
  0xb1   : > { %2345 = vmatpush.bf16.msrb.mxu1 %v3672_v52  ;;  %2358 = vmatpush.bf16.msrb.mxu2 %v3800_v54  ;;  %v4138_v8 = vld [vmem:[%s4875_s25 + $0x584] sm:$0xf]  ;;  %v3893_v14 = vld [vmem:[%s4875_s25 + $0x790] sm:$0xf0]  ;;  %v3512_v15 = vor.u32 %v4106_v6, %v3509_v7  ;;  %v3051_v7 = vld [vmem:[%s4875_s25 + $0xe8] sm:$0xf] }
  0xb2   : > { %v4170_v11 = vld [vmem:[%s4875_s25 + $0x684] sm:$0xf]  ;;  %v3640_v16 = vor.u32 %v4138_v8, %v3637_v10  ;;  %v3493_v20 = vld [vmem:[%s4875_s25 + $0x470] sm:$0xf0]  ;;  %v3993_v8 = vld [vmem:[%s4875_s25 + $0xf4] sm:$0xf0] }
  0xb3   : > { %2371 = vmatpush.bf16.msrb.mxu3 %v3928_v58  ;;  %v4202_v13 = vld [vmem:[%s4875_s25 + $0x784] sm:$0xf]  ;;  %2333 = vmatpush.bf16.msrb.mxu0 %v3528_v1  ;;  %v3768_v18 = vor.u32 %v4170_v11, %v3765_v12  ;;  %v3621_v24 = vld [vmem:[%s4875_s25 + $0x570] sm:$0xf0]  ;;  %v4025_v11 = vld [vmem:[%s4875_s25 + $0x1f4] sm:$0xf0] }
  0xb4   : > { %v4102_v19 = vld [vmem:[%s4875_s25 + $0x464] sm:$0xf]  ;;  %v3896_v22 = vor.u32 %v4202_v13, %v3893_v14  ;;  %v3749_v26 = vld [vmem:[%s4875_s25 + $0x670] sm:$0xf0]  ;;  %v3307_v12 = vld [vmem:[%s4875_s25 + $0x2e8] sm:$0xf] }
  0xb5   : > { %2346 = vmatpush.bf16.msrb.mxu1 %v3656_v2  ;;  %2359 = vmatpush.bf16.msrb.mxu2 %v3784_v3  ;;  %v4134_v21 = vld [vmem:[%s4875_s25 + $0x564] sm:$0xf]  ;;  %v3877_v28 = vld [vmem:[%s4875_s25 + $0x770] sm:$0xf0]  ;;  %v3496_v29 = vor.u32 %v4102_v19, %v3493_v20  ;;  %v4057_v13 = vld [vmem:[%s4875_s25 + $0x2f4] sm:$0xf0]  ;;  %v3052_v20 = vor.u32 %v3993_v8, %v3051_v7 }
  0xb6   : > { %v4166_v25 = vld [vmem:[%s4875_s25 + $0x664] sm:$0xf]  ;;  %v3624_v30 = vor.u32 %v4134_v21, %v3621_v24  ;;  %v3477_v33 = vld [vmem:[%s4875_s25 + $0x450] sm:$0xf0]  ;;  %v3035_v24 = vld [vmem:[%s4875_s25 + $0xc8] sm:$0xf] }
  0xb7   : > { %2372 = vmatpush.bf16.msrb.mxu3 %v3912_v9  ;;  %v4198_v27 = vld [vmem:[%s4875_s25 + $0x764] sm:$0xf]  ;;  %2334 = vmatpush.bf16.msrb.mxu0 %v3512_v15  ;;  %v3752_v31 = vor.u32 %v4166_v25, %v3749_v26  ;;  %v3605_v36 = vld [vmem:[%s4875_s25 + $0x550] sm:$0xf0]  ;;  %v3179_v9 = vld [vmem:[%s4875_s25 + $0x1e8] sm:$0xf] }
  0xb8   : > { %v4098_v32 = vld [vmem:[%s4875_s25 + $0x444] sm:$0xf]  ;;  %v3880_v35 = vor.u32 %v4198_v27, %v3877_v28  ;;  %v3733_v38 = vld [vmem:[%s4875_s25 + $0x650] sm:$0xf0]  ;;  %v3180_v21 = vor.u32 %v4025_v11, %v3179_v9  ;;  %v3989_v25 = vld [vmem:[%s4875_s25 + $0xd4] sm:$0xf0] }
  0xb9   : > { %2347 = vmatpush.bf16.msrb.mxu1 %v3640_v16  ;;  %2360 = vmatpush.bf16.msrb.mxu2 %v3768_v18  ;;  %v4130_v34 = vld [vmem:[%s4875_s25 + $0x544] sm:$0xf]  ;;  %v3861_v40 = vld [vmem:[%s4875_s25 + $0x750] sm:$0xf0]  ;;  %v3480_v41 = vor.u32 %v4098_v32, %v3477_v33  ;;  %v3435_v16 = vld [vmem:[%s4875_s25 + $0x3e8] sm:$0xf]  ;;  %v3036_v33 = vor.u32 %v3989_v25, %v3035_v24 }
  0xba   : > { %v4162_v37 = vld [vmem:[%s4875_s25 + $0x644] sm:$0xf]  ;;  %v3608_v42 = vor.u32 %v4130_v34, %v3605_v36  ;;  %v3461_v47 = vld [vmem:[%s4875_s25 + $0x430] sm:$0xf0]  ;;  %v4089_v18 = vld [vmem:[%s4875_s25 + $0x3f4] sm:$0xf0] }
  0xbb   : > { %2373 = vmatpush.bf16.msrb.mxu3 %v3896_v22  ;;  %v4194_v39 = vld [vmem:[%s4875_s25 + $0x744] sm:$0xf]  ;;  %2335 = vmatpush.bf16.msrb.mxu0 %v3496_v29  ;;  %v3736_v43 = vor.u32 %v4162_v37, %v3733_v38  ;;  %v3589_v50 = vld [vmem:[%s4875_s25 + $0x530] sm:$0xf0]  ;;  %v3308_v22 = vor.u32 %v4057_v13, %v3307_v12  ;;  %v3163_v26 = vld [vmem:[%s4875_s25 + $0x1c8] sm:$0xf]  ;;  %v3436_v27 = vor.u32 %v4089_v18, %v3435_v16 }
  0xbc   : > { %v4094_v46 = vld [vmem:[%s4875_s25 + $0x424] sm:$0xf]  ;;  %v3864_v49 = vor.u32 %v4194_v39, %v3861_v40  ;;  %v3717_v52 = vld [vmem:[%s4875_s25 + $0x630] sm:$0xf0]  ;;  %v4021_v28 = vld [vmem:[%s4875_s25 + $0x1d4] sm:$0xf0] }
  0xbd   : > { %2348 = vmatpush.bf16.msrb.mxu1 %v3624_v30  ;;  %2361 = vmatpush.bf16.msrb.mxu2 %v3752_v31  ;;  %v4126_v48 = vld [vmem:[%s4875_s25 + $0x524] sm:$0xf]  ;;  %v3845_v55 = vld [vmem:[%s4875_s25 + $0x730] sm:$0xf0]  ;;  %v3464_v56 = vor.u32 %v4094_v46, %v3461_v47  ;;  %v3291_v29 = vld [vmem:[%s4875_s25 + $0x2c8] sm:$0xf]  ;;  %v3164_v34 = vor.u32 %v4021_v28, %v3163_v26 }
  0xbe   : > { %v4158_v51 = vld [vmem:[%s4875_s25 + $0x624] sm:$0xf]  ;;  %v3445_v58 = vld [vmem:[%s4875_s25 + $0x410] sm:$0xf0]  ;;  %v3592_v59 = vor.u32 %v4126_v48, %v3589_v50  ;;  %v4053_v30 = vld [vmem:[%s4875_s25 + $0x2d4] sm:$0xf0] }
  0xbf   : > { %2374 = vmatpush.bf16.msrb.mxu3 %v3880_v35  ;;  %v4190_v54 = vld [vmem:[%s4875_s25 + $0x724] sm:$0xf]  ;;  %2336 = vmatpush.bf16.msrb.mxu0 %v3480_v41  ;;  %v3720_v60 = vor.u32 %v4158_v51, %v3717_v52  ;;  %v3573_v62 = vld [vmem:[%s4875_s25 + $0x510] sm:$0xf0]  ;;  %v3419_v31 = vld [vmem:[%s4875_s25 + $0x3c8] sm:$0xf]  ;;  %v3292_v35 = vor.u32 %v4053_v30, %v3291_v29 }
  0xc0   : > { %v4090_v57 = vld [vmem:[%s4875_s25 + $0x404] sm:$0xf]  ;;  %v3848_v1 = vor.u32 %v4190_v54, %v3845_v55  ;;  %v3701_v2 = vld [vmem:[%s4875_s25 + $0x610] sm:$0xf0]  ;;  %v4085_v32 = vld [vmem:[%s4875_s25 + $0x3d4] sm:$0xf0] }
  0xc1   : > { %2349 = vmatpush.bf16.msrb.mxu1 %v3608_v42  ;;  %2362 = vmatpush.bf16.msrb.mxu2 %v3736_v43  ;;  %v4122_v61 = vld [vmem:[%s4875_s25 + $0x504] sm:$0xf]  ;;  %v3829_v6 = vld [vmem:[%s4875_s25 + $0x710] sm:$0xf0]  ;;  %v3448_v10 = vor.u32 %v4090_v57, %v3445_v58  ;;  %v3019_v36 = vld [vmem:[%s4875_s25 + $0xa8] sm:$0xf]  ;;  %v3420_v39 = vor.u32 %v4085_v32, %v3419_v31 }
  0xc2   : > { %v4154_v63 = vld [vmem:[%s4875_s25 + $0x604] sm:$0xf]  ;;  %v3576_v14 = vor.u32 %v4122_v61, %v3573_v62  ;;  %v3985_v37 = vld [vmem:[%s4875_s25 + $0xb4] sm:$0xf0]  ;;  %v3147_v38 = vld [vmem:[%s4875_s25 + $0x1a8] sm:$0xf] }
  0xc3   : > { %2375 = vmatpush.bf16.msrb.mxu3 %v3864_v49  ;;  %v4186_v3 = vld [vmem:[%s4875_s25 + $0x704] sm:$0xf]  ;;  %2337 = vmatpush.bf16.msrb.mxu0 %v3464_v56  ;;  %v3704_v15 = vor.u32 %v4154_v63, %v3701_v2  ;;  %v4017_v40 = vld [vmem:[%s4875_s25 + $0x1b4] sm:$0xf0]  ;;  %v3275_v41 = vld [vmem:[%s4875_s25 + $0x2a8] sm:$0xf]  ;;  %v3020_v47 = vor.u32 %v3985_v37, %v3019_v36 }
  0xc4   : > { %v3832_v19 = vor.u32 %v4186_v3, %v3829_v6  ;;  %v4049_v42 = vld [vmem:[%s4875_s25 + $0x2b4] sm:$0xf0]  ;;  %v3403_v43 = vld [vmem:[%s4875_s25 + $0x3a8] sm:$0xf]  ;;  %v3148_v48 = vor.u32 %v4017_v40, %v3147_v38 }
  0xc5   : > { %2350 = vmatpush.bf16.msrb.mxu1 %v3592_v59  ;;  %2363 = vmatpush.bf16.msrb.mxu2 %v3720_v60  ;;  %v4081_v46 = vld [vmem:[%s4875_s25 + $0x3b4] sm:$0xf0]  ;;  %v3276_v49 = vor.u32 %v4049_v42, %v3275_v41  ;;  %v3003_v50 = vld [vmem:[%s4875_s25 + $0x88] sm:$0xf] }
  0xc6   : > { %v3981_v51 = vld [vmem:[%s4875_s25 + $0x94] sm:$0xf0]  ;;  %v3131_v52 = vld [vmem:[%s4875_s25 + $0x188] sm:$0xf]  ;;  %v3404_v54 = vor.u32 %v4081_v46, %v3403_v43 }
  0xc7   : > { %2376 = vmatpush.bf16.msrb.mxu3 %v3848_v1  ;;  %2338 = vmatpush.bf16.msrb.mxu0 %v3448_v10  ;;  %v4013_v55 = vld [vmem:[%s4875_s25 + $0x194] sm:$0xf0]  ;;  %v3259_v56 = vld [vmem:[%s4875_s25 + $0x288] sm:$0xf]  ;;  %v3004_v60 = vor.u32 %v3981_v51, %v3003_v50 }
  0xc8   : > { %v4045_v57 = vld [vmem:[%s4875_s25 + $0x294] sm:$0xf0]  ;;  %v3387_v58 = vld [vmem:[%s4875_s25 + $0x388] sm:$0xf]  ;;  %v3132_v61 = vor.u32 %v4013_v55, %v3131_v52 }
  0xc9   : > { %2351 = vmatpush.bf16.msrb.mxu1 %v3576_v14  ;;  %2364 = vmatpush.bf16.msrb.mxu2 %v3704_v15  ;;  %v4077_v59 = vld [vmem:[%s4875_s25 + $0x394] sm:$0xf0]  ;;  %v3260_v62 = vor.u32 %v4045_v57, %v3259_v56  ;;  %v2987_v63 = vld [vmem:[%s4875_s25 + $0x68] sm:$0xf] }
  0xca   : > { %2339 = vmatmul.bf16.vlgmr.msrb.gmra.mxu0 %v5039_v4  ;;  %v3977_v1 = vld [vmem:[%s4875_s25 + $0x74] sm:$0xf0]  ;;  %v3115_v2 = vld [vmem:[%s4875_s25 + $0x168] sm:$0xf]  ;;  %v3388_v3 = vor.u32 %v4077_v59, %v3387_v58 }
  0xcb   : > { %2377 = vmatpush.bf16.msrb.mxu3 %v3832_v19  ;;  %2383 = vmatpush.bf16.msra.mxu0 %v3052_v20  ;;  %v4009_v6 = vld [vmem:[%s4875_s25 + $0x174] sm:$0xf0]  ;;  %v3243_v7 = vld [vmem:[%s4875_s25 + $0x268] sm:$0xf]  ;;  %v2988_v11 = vor.u32 %v3977_v1, %v2987_v63 }
  0xcc   : > { %2365 = vmatmul.bf16.vlgmr.msrb.gmra.mxu2 %v5035_v0  ;;  %2352 = vmatmul.bf16.vlgmr.msrb.gmra.mxu1 %v5050_v17  ;;  %v4041_v8 = vld [vmem:[%s4875_s25 + $0x274] sm:$0xf0]  ;;  %v3371_v9 = vld [vmem:[%s4875_s25 + $0x368] sm:$0xf]  ;;  %v3116_v12 = vor.u32 %v4009_v6, %v3115_v2 }
  0xcd   : > { %2396 = vmatpush.bf16.msra.mxu1 %v3180_v21  ;;  %2409 = vmatpush.bf16.msra.mxu2 %v3308_v22  ;;  %v4073_v10 = vld [vmem:[%s4875_s25 + $0x374] sm:$0xf0]  ;;  %v3244_v13 = vor.u32 %v4041_v8, %v3243_v7  ;;  %v2971_v14 = vld [vmem:[%s4875_s25 + $0x48] sm:$0xf] }
  0xce   : > { %2378 = vmatmul.bf16.vlgmr.msrb.gmra.mxu3 %v5041_v5  ;;  %v3973_v15 = vld [vmem:[%s4875_s25 + $0x54] sm:$0xf0]  ;;  %v3099_v16 = vld [vmem:[%s4875_s25 + $0x148] sm:$0xf]  ;;  %v3372_v18 = vor.u32 %v4073_v10, %v3371_v9 }
  0xcf   : > { %2422 = vmatpush.bf16.msra.mxu3 %v3436_v27  ;;  %2384 = vmatpush.bf16.msra.mxu0 %v3036_v33  ;;  %v4005_v19 = vld [vmem:[%s4875_s25 + $0x154] sm:$0xf0]  ;;  %v3227_v20 = vld [vmem:[%s4875_s25 + $0x248] sm:$0xf]  ;;  %v2972_v25 = vor.u32 %v3973_v15, %v2971_v14 }
  0xd0   : > { %v4037_v21 = vld [vmem:[%s4875_s25 + $0x254] sm:$0xf0]  ;;  %v3355_v22 = vld [vmem:[%s4875_s25 + $0x348] sm:$0xf]  ;;  %v3100_v26 = vor.u32 %v4005_v19, %v3099_v16 }
  0xd1   : > { %2397 = vmatpush.bf16.msra.mxu1 %v3164_v34  ;;  %2410 = vmatpush.bf16.msra.mxu2 %v3292_v35  ;;  %v4069_v24 = vld [vmem:[%s4875_s25 + $0x354] sm:$0xf0]  ;;  %v3228_v27 = vor.u32 %v4037_v21, %v3227_v20  ;;  %v2955_v28 = vld [vmem:[%s4875_s25 + $0x28] sm:$0xf] }
  0xd2   : > { %v3969_v29 = vld [vmem:[%s4875_s25 + $0x34] sm:$0xf0]  ;;  %v3083_v30 = vld [vmem:[%s4875_s25 + $0x128] sm:$0xf]  ;;  %v3356_v31 = vor.u32 %v4069_v24, %v3355_v22 }
  0xd3   : > { %2423 = vmatpush.bf16.msra.mxu3 %v3420_v39  ;;  %2385 = vmatpush.bf16.msra.mxu0 %v3020_v47  ;;  %v4001_v32 = vld [vmem:[%s4875_s25 + $0x134] sm:$0xf0]  ;;  %v3211_v33 = vld [vmem:[%s4875_s25 + $0x228] sm:$0xf]  ;;  %v2956_v37 = vor.u32 %v3969_v29, %v2955_v28 }
  0xd4   : > { %v4033_v34 = vld [vmem:[%s4875_s25 + $0x234] sm:$0xf0]  ;;  %v3339_v35 = vld [vmem:[%s4875_s25 + $0x328] sm:$0xf]  ;;  %v3084_v40 = vor.u32 %v4001_v32, %v3083_v30 }
  0xd5   : > { %2398 = vmatpush.bf16.msra.mxu1 %v3148_v48  ;;  %2411 = vmatpush.bf16.msra.mxu2 %v3276_v49  ;;  %v4065_v36 = vld [vmem:[%s4875_s25 + $0x334] sm:$0xf0]  ;;  %v2939_v38 = vld [vmem:[%s4875_s25 + $0x8] sm:$0xf]  ;;  %v3212_v41 = vor.u32 %v4033_v34, %v3211_v33 }
  0xd6   : > { %v3965_v39 = vld [vmem:[%s4875_s25 + $0x14] sm:$0xf0]  ;;  %v3067_v42 = vld [vmem:[%s4875_s25 + $0x108] sm:$0xf]  ;;  %v3340_v47 = vor.u32 %v4065_v36, %v3339_v35 }
  0xd7   : > { %2424 = vmatpush.bf16.msra.mxu3 %v3404_v54  ;;  %2386 = vmatpush.bf16.msra.mxu0 %v3004_v60  ;;  %v3997_v43 = vld [vmem:[%s4875_s25 + $0x114] sm:$0xf0]  ;;  %v3195_v46 = vld [vmem:[%s4875_s25 + $0x208] sm:$0xf]  ;;  %v2940_v55 = vor.u32 %v3965_v39, %v2939_v38 }
  0xd8   : > { %v4029_v48 = vld [vmem:[%s4875_s25 + $0x214] sm:$0xf0]  ;;  %v3323_v49 = vld [vmem:[%s4875_s25 + $0x308] sm:$0xf]  ;;  %v3068_v59 = vor.u32 %v3997_v43, %v3067_v42 }
  0xd9   : > { %2399 = vmatpush.bf16.msra.mxu1 %v3132_v61  ;;  %2412 = vmatpush.bf16.msra.mxu2 %v3260_v62  ;;  %v4061_v50 = vld [vmem:[%s4875_s25 + $0x314] sm:$0xf0]  ;;  %v3563_v51 = vld [vmem:[%s4875_s25 + $0x4e8] sm:$0xf]  ;;  %v3196_v60 = vor.u32 %v4029_v48, %v3195_v46 }
  0xda   : > { %v4121_v52 = vld [vmem:[%s4875_s25 + $0x4f4] sm:$0xf0]  ;;  %v3691_v54 = vld [vmem:[%s4875_s25 + $0x5e8] sm:$0xf]  ;;  %v3324_v63 = vor.u32 %v4061_v50, %v3323_v49 }
  0xdb   : > { %2425 = vmatpush.bf16.msra.mxu3 %v3388_v3  ;;  %2387 = vmatpush.bf16.msra.mxu0 %v2988_v11  ;;  %v4153_v56 = vld [vmem:[%s4875_s25 + $0x5f4] sm:$0xf0]  ;;  %v3819_v57 = vld [vmem:[%s4875_s25 + $0x6e8] sm:$0xf]  ;;  %v3564_v1 = vor.u32 %v4121_v52, %v3563_v51 }
  0xdc   : > { %v4185_v58 = vld [vmem:[%s4875_s25 + $0x6f4] sm:$0xf0]  ;;  %v3947_v61 = vld [vmem:[%s4875_s25 + $0x7e8] sm:$0xf]  ;;  %v3692_v2 = vor.u32 %v4153_v56, %v3691_v54 }
  0xdd   : > { %2400 = vmatpush.bf16.msra.mxu1 %v3116_v12  ;;  %2413 = vmatpush.bf16.msra.mxu2 %v3244_v13  ;;  %v4217_v62 = vld [vmem:[%s4875_s25 + $0x7f4] sm:$0xf0]  ;;  %v3820_v3 = vor.u32 %v4185_v58, %v3819_v57  ;;  %v3547_v6 = vld [vmem:[%s4875_s25 + $0x4c8] sm:$0xf] }
  0xde   : > { %v4117_v7 = vld [vmem:[%s4875_s25 + $0x4d4] sm:$0xf0]  ;;  %v3675_v8 = vld [vmem:[%s4875_s25 + $0x5c8] sm:$0xf]  ;;  %v3948_v9 = vor.u32 %v4217_v62, %v3947_v61 }
  0xdf   : > { %2426 = vmatpush.bf16.msra.mxu3 %v3372_v18  ;;  %2388 = vmatpush.bf16.msra.mxu0 %v2972_v25  ;;  %v4149_v10 = vld [vmem:[%s4875_s25 + $0x5d4] sm:$0xf0]  ;;  %v3803_v11 = vld [vmem:[%s4875_s25 + $0x6c8] sm:$0xf]  ;;  %v3548_v15 = vor.u32 %v4117_v7, %v3547_v6 }
  0xe0   : > { %v4181_v12 = vld [vmem:[%s4875_s25 + $0x6d4] sm:$0xf0]  ;;  %v3931_v13 = vld [vmem:[%s4875_s25 + $0x7c8] sm:$0xf]  ;;  %v3676_v16 = vor.u32 %v4149_v10, %v3675_v8 }
  0xe1   : > { %2401 = vmatpush.bf16.msra.mxu1 %v3100_v26  ;;  %2414 = vmatpush.bf16.msra.mxu2 %v3228_v27  ;;  %v4213_v14 = vld [vmem:[%s4875_s25 + $0x7d4] sm:$0xf0]  ;;  %v3804_v18 = vor.u32 %v4181_v12, %v3803_v11  ;;  %v3531_v19 = vld [vmem:[%s4875_s25 + $0x4a8] sm:$0xf] }
  0xe2   : > { %v4113_v20 = vld [vmem:[%s4875_s25 + $0x4b4] sm:$0xf0]  ;;  %v3659_v21 = vld [vmem:[%s4875_s25 + $0x5a8] sm:$0xf]  ;;  %v3932_v22 = vor.u32 %v4213_v14, %v3931_v13 }
  0xe3   : > { %2427 = vmatpush.bf16.msra.mxu3 %v3356_v31  ;;  %2389 = vmatpush.bf16.msra.mxu0 %v2956_v37  ;;  %v4145_v24 = vld [vmem:[%s4875_s25 + $0x5b4] sm:$0xf0]  ;;  %v3787_v25 = vld [vmem:[%s4875_s25 + $0x6a8] sm:$0xf]  ;;  %v3532_v29 = vor.u32 %v4113_v20, %v3531_v19 }
  0xe4   : > { %v4177_v26 = vld [vmem:[%s4875_s25 + $0x6b4] sm:$0xf0]  ;;  %v3915_v27 = vld [vmem:[%s4875_s25 + $0x7a8] sm:$0xf]  ;;  %v3660_v30 = vor.u32 %v4145_v24, %v3659_v21 }
  0xe5   : > { %2402 = vmatpush.bf16.msra.mxu1 %v3084_v40  ;;  %2415 = vmatpush.bf16.msra.mxu2 %v3212_v41  ;;  %v4209_v28 = vld [vmem:[%s4875_s25 + $0x7b4] sm:$0xf0]  ;;  %v3788_v31 = vor.u32 %v4177_v26, %v3787_v25  ;;  %v3515_v32 = vld [vmem:[%s4875_s25 + $0x488] sm:$0xf] }
  0xe6   : > { %v4109_v33 = vld [vmem:[%s4875_s25 + $0x494] sm:$0xf0]  ;;  %v3643_v34 = vld [vmem:[%s4875_s25 + $0x588] sm:$0xf]  ;;  %v3916_v35 = vor.u32 %v4209_v28, %v3915_v27 }
  0xe7   : > { %2428 = vmatpush.bf16.msra.mxu3 %v3340_v47  ;;  %2390 = vmatpush.bf16.msra.mxu0 %v2940_v55  ;;  %v4141_v36 = vld [vmem:[%s4875_s25 + $0x594] sm:$0xf0]  ;;  %v3771_v37 = vld [vmem:[%s4875_s25 + $0x688] sm:$0xf]  ;;  %v3516_v41 = vor.u32 %v4109_v33, %v3515_v32 }
  0xe8   : > { %v4173_v38 = vld [vmem:[%s4875_s25 + $0x694] sm:$0xf0]  ;;  %v3899_v39 = vld [vmem:[%s4875_s25 + $0x788] sm:$0xf]  ;;  %v3644_v42 = vor.u32 %v4141_v36, %v3643_v34  ;;  %v3991_v36 = vld [vmem:[%s4875_s25 + $0xec] sm:$0xf] }
  0xe9   : > { %2403 = vmatpush.bf16.msra.mxu1 %v3068_v59  ;;  %2416 = vmatpush.bf16.msra.mxu2 %v3196_v60  ;;  %v4205_v40 = vld [vmem:[%s4875_s25 + $0x794] sm:$0xf0]  ;;  %v3772_v43 = vor.u32 %v4173_v38, %v3771_v37  ;;  %v3499_v46 = vld [vmem:[%s4875_s25 + $0x468] sm:$0xf]  ;;  %v3053_v37 = vld [vmem:[%s4875_s25 + $0xf8] sm:$0xf0] }
  0xea   : > { %2391 = vmatmul.bf16.vlgmr.msra.gmra.mxu0 %v4988_v44  ;;  %v4105_v47 = vld [vmem:[%s4875_s25 + $0x474] sm:$0xf0]  ;;  %v3627_v48 = vld [vmem:[%s4875_s25 + $0x568] sm:$0xf]  ;;  %v3900_v49 = vor.u32 %v4205_v40, %v3899_v39  ;;  %v4023_v38 = vld [vmem:[%s4875_s25 + $0x1ec] sm:$0xf] }
  0xeb   : > { %2429 = vmatpush.bf16.msra.mxu3 %v3324_v63  ;;  %2435 = vmatpush.bf16.msrb.mxu0 %v3564_v1  ;;  %v4137_v50 = vld [vmem:[%s4875_s25 + $0x574] sm:$0xf0]  ;;  %v3755_v51 = vld [vmem:[%s4875_s25 + $0x668] sm:$0xf]  ;;  %v3500_v56 = vor.u32 %v4105_v47, %v3499_v46  ;;  %v3181_v40 = vld [vmem:[%s4875_s25 + $0x1f8] sm:$0xf0] }
  0xec   : > { %2417 = vmatmul.bf16.vlgmr.msra.gmra.mxu2 %v4978_v23  ;;  %2404 = vmatmul.bf16.vlgmr.msra.gmra.mxu1 %v4995_v53  ;;  %v4169_v52 = vld [vmem:[%s4875_s25 + $0x674] sm:$0xf0]  ;;  %v3883_v54 = vld [vmem:[%s4875_s25 + $0x768] sm:$0xf]  ;;  %v3628_v57 = vor.u32 %v4137_v50, %v3627_v48  ;;  %v4087_v47 = vld [vmem:[%s4875_s25 + $0x3ec] sm:$0xf]  ;;  %v3056_v50 = vor.u32 %v3991_v36, %v3053_v37 }
  0xed   : > { %2448 = vmatpush.bf16.msrb.mxu1 %v3692_v2  ;;  %2461 = vmatpush.bf16.msrb.mxu2 %v3820_v3  ;;  %v4201_v55 = vld [vmem:[%s4875_s25 + $0x774] sm:$0xf0]  ;;  %v3756_v58 = vor.u32 %v4169_v52, %v3755_v51  ;;  %v3483_v59 = vld [vmem:[%s4875_s25 + $0x448] sm:$0xf]  ;;  %v2197_v25 = vpop.f32.mrf.mxu1  ;;  %v3437_v48 = vld [vmem:[%s4875_s25 + $0x3f8] sm:$0xf0]  ;;  %v3184_v52 = vor.u32 %v4023_v38, %v3181_v40 }
  0xee   : > { %2430 = vmatmul.bf16.vlgmr.msra.gmra.mxu3 %v4990_v45  ;;  %v4101_v60 = vld [vmem:[%s4875_s25 + $0x454] sm:$0xf0]  ;;  %v3611_v61 = vld [vmem:[%s4875_s25 + $0x548] sm:$0xf]  ;;  %v3884_v62 = vor.u32 %v4201_v55, %v3883_v54  ;;  %v3975_v36 = vld [vmem:[%s4875_s25 + $0x6c] sm:$0xf] }
  0xef   : > { %2474 = vmatpush.bf16.msrb.mxu3 %v3948_v9  ;;  %2436 = vmatpush.bf16.msrb.mxu0 %v3548_v15  ;;  %v4133_v63 = vld [vmem:[%s4875_s25 + $0x554] sm:$0xf0]  ;;  %v3739_v1 = vld [vmem:[%s4875_s25 + $0x648] sm:$0xf]  ;;  %v3484_v7 = vor.u32 %v4101_v60, %v3483_v59  ;;  %v3440_v60 = vor.u32 %v4087_v47, %v3437_v48  ;;  %v4007_v40 = vld [vmem:[%s4875_s25 + $0x16c] sm:$0xf] }
  0xf0   : > { %v4165_v2 = vld [vmem:[%s4875_s25 + $0x654] sm:$0xf0]  ;;  %v3867_v3 = vld [vmem:[%s4875_s25 + $0x748] sm:$0xf]  ;;  %v3612_v8 = vor.u32 %v4133_v63, %v3611_v61  ;;  %v2223_v51 = vpop.f32.mrf.mxu3  ;;  %v3165_v61 = vld [vmem:[%s4875_s25 + $0x1d8] sm:$0xf0] }
  0xf1   : > { %2449 = vmatpush.bf16.msrb.mxu1 %v3676_v16  ;;  %2462 = vmatpush.bf16.msrb.mxu2 %v3804_v18  ;;  %v4197_v6 = vld [vmem:[%s4875_s25 + $0x754] sm:$0xf0]  ;;  %v3740_v9 = vor.u32 %v4165_v2, %v3739_v1  ;;  %v3467_v10 = vld [vmem:[%s4875_s25 + $0x428] sm:$0xf]  ;;  %v3293_v63 = vld [vmem:[%s4875_s25 + $0x2d8] sm:$0xf0] }
  0xf2   : > { %v4097_v11 = vld [vmem:[%s4875_s25 + $0x434] sm:$0xf0]  ;;  %v3595_v12 = vld [vmem:[%s4875_s25 + $0x528] sm:$0xf]  ;;  %v3868_v13 = vor.u32 %v4197_v6, %v3867_v3  ;;  %v4083_v2 = vld [vmem:[%s4875_s25 + $0x3cc] sm:$0xf] }
  0xf3   : > { %2475 = vmatpush.bf16.msrb.mxu3 %v3932_v22  ;;  %2437 = vmatpush.bf16.msrb.mxu0 %v3532_v29  ;;  %v4129_v14 = vld [vmem:[%s4875_s25 + $0x534] sm:$0xf0]  ;;  %v3723_v15 = vld [vmem:[%s4875_s25 + $0x628] sm:$0xf]  ;;  %v3468_v21 = vor.u32 %v4097_v11, %v3467_v10  ;;  %v3421_v3 = vld [vmem:[%s4875_s25 + $0x3d8] sm:$0xf0] }
  0xf4   : > { %v4161_v16 = vld [vmem:[%s4875_s25 + $0x634] sm:$0xf0]  ;;  %v3851_v18 = vld [vmem:[%s4875_s25 + $0x728] sm:$0xf]  ;;  %v3596_v26 = vor.u32 %v4129_v14, %v3595_v12  ;;  %v3983_v11 = vld [vmem:[%s4875_s25 + $0xac] sm:$0xf]  ;;  %v3424_v14 = vor.u32 %v4083_v2, %v3421_v3 }
  0xf5   : > { %2450 = vmatpush.bf16.msrb.mxu1 %v3660_v30  ;;  %2463 = vmatpush.bf16.msrb.mxu2 %v3788_v31  ;;  %v4193_v19 = vld [vmem:[%s4875_s25 + $0x734] sm:$0xf0]  ;;  %v3451_v22 = vld [vmem:[%s4875_s25 + $0x408] sm:$0xf]  ;;  %v3724_v27 = vor.u32 %v4161_v16, %v3723_v15  ;;  %v2199_v1 = vpop.f32.mrf.mxu1  ;;  %v3021_v12 = vld [vmem:[%s4875_s25 + $0xb8] sm:$0xf0] }
  0xf6   : > { %v4093_v24 = vld [vmem:[%s4875_s25 + $0x414] sm:$0xf0]  ;;  %v3579_v28 = vld [vmem:[%s4875_s25 + $0x508] sm:$0xf]  ;;  %v3852_v32 = vor.u32 %v4193_v19, %v3851_v18  ;;  %v3149_v15 = vld [vmem:[%s4875_s25 + $0x1b8] sm:$0xf0] }
  0xf7   : > { %2476 = vmatpush.bf16.msrb.mxu3 %v3916_v35  ;;  %2438 = vmatpush.bf16.msrb.mxu0 %v3516_v41  ;;  %v4125_v29 = vld [vmem:[%s4875_s25 + $0x514] sm:$0xf0]  ;;  %v3707_v30 = vld [vmem:[%s4875_s25 + $0x608] sm:$0xf]  ;;  %v3452_v39 = vor.u32 %v4093_v24, %v3451_v22  ;;  %v4055_v41 = vld [vmem:[%s4875_s25 + $0x2ec] sm:$0xf] }
  0xf8   : > { %v4157_v33 = vld [vmem:[%s4875_s25 + $0x614] sm:$0xf0]  ;;  %v3835_v34 = vld [vmem:[%s4875_s25 + $0x708] sm:$0xf]  ;;  %v4047_v16 = vld [vmem:[%s4875_s25 + $0x2ac] sm:$0xf]  ;;  %v2225_v24 = vpop.f32.mrf.mxu3 }
  0xf9   : > { %2451 = vmatpush.bf16.msrb.mxu1 %v3644_v42  ;;  %2464 = vmatpush.bf16.msrb.mxu2 %v3772_v43  ;;  %v4189_v35 = vld [vmem:[%s4875_s25 + $0x714] sm:$0xf0]  ;;  %v3309_v42 = vld [vmem:[%s4875_s25 + $0x2f8] sm:$0xf0]  ;;  %v3580_v43 = vor.u32 %v4125_v29, %v3579_v28  ;;  %v3708_v46 = vor.u32 %v4157_v33, %v3707_v30  ;;  %v4079_v19 = vld [vmem:[%s4875_s25 + $0x3ac] sm:$0xf] }
  0xfa   : > { %v2184_v20 = vpop.f32.mrf.mxu0  ;;  %v3312_v54 = vor.u32 %v4055_v41, %v3309_v42  ;;  %v3277_v18 = vld [vmem:[%s4875_s25 + $0x2b8] sm:$0xf0]  ;;  %v3979_v22 = vld [vmem:[%s4875_s25 + $0x8c] sm:$0xf] }
  0xfb   : > { %2477 = vmatpush.bf16.msrb.mxu3 %v3900_v49  ;;  %2439 = vmatpush.bf16.msrb.mxu0 %v3500_v56  ;;  %v3836_v49 = vor.u32 %v4189_v35, %v3835_v34  ;;  %v2198_v55 = vadd.f32 %v2197_v25, %v2184_v20  ;;  %v3987_v56 = vld [vmem:[%s4875_s25 + $0xcc] sm:$0xf]  ;;  %v3405_v20 = vld [vmem:[%s4875_s25 + $0x3b8] sm:$0xf0] }
  0xfc   : > { %v2210_v31 = vpop.f32.mrf.mxu2  ;;  %v3005_v28 = vld [vmem:[%s4875_s25 + $0x98] sm:$0xf0]  ;;  %v4011_v29 = vld [vmem:[%s4875_s25 + $0x18c] sm:$0xf] }
  0xfd   : > { %2452 = vmatpush.bf16.msrb.mxu1 %v3628_v57  ;;  %2465 = vmatpush.bf16.msrb.mxu2 %v3756_v58  ;;  %v3037_v57 = vld [vmem:[%s4875_s25 + $0xd8] sm:$0xf0]  ;;  %v4019_v58 = vld [vmem:[%s4875_s25 + $0x1cc] sm:$0xf]  ;;  %v2211_v10 = vadd.f32 %v2210_v31, %v2198_v55  ;;  %v3408_v31 = vor.u32 %v4079_v19, %v3405_v20  ;;  %v3008_v38 = vor.u32 %v3979_v22, %v3005_v28  ;;  %v2660_v22 = vld [vmem:[%s5375_s27] sm:$0xff] }
  0xfe   : > { %v3133_v30 = vld [vmem:[%s4875_s25 + $0x198] sm:$0xf0]  ;;  %v4075_v34 = vld [vmem:[%s4875_s25 + $0x38c] sm:$0xf] }
  0xff   : > { %2478 = vmatpush.bf16.msrb.mxu3 %v3884_v62  ;;  %2440 = vmatpush.bf16.msrb.mxu0 %v3484_v7  ;;  %v4051_v62 = vld [vmem:[%s4875_s25 + $0x2cc] sm:$0xf]  ;;  %v3040_v7 = vor.u32 %v3987_v56, %v3037_v57  ;;  %v2224_v25 = vadd.f32 %v2223_v51, %v2211_v10  ;;  %v3261_v33 = vld [vmem:[%s4875_s25 + $0x298] sm:$0xf0]  ;;  %v2629_v51 = vld [vmem:[%s5353_s18] sm:$0xff] }
 0x100   : > { %v3389_v35 = vld [vmem:[%s4875_s25 + $0x398] sm:$0xf0]  ;;  %v2606_v37 = vld [vmem:[%s510_s12] sm:$0xf]  ;;  %v2633_v1 = vmul.f32 0.35443938, %v2629_v51 }
 0x101   : > { %2453 = vmatpush.bf16.msrb.mxu1 %v3612_v8  ;;  %2466 = vmatpush.bf16.msrb.mxu2 %v3740_v9  ;;  %v3168_v8 = vor.u32 %v4019_v58, %v3165_v61  ;;  %v3296_v9 = vor.u32 %v4051_v62, %v3293_v63  ;;  %v3117_v41 = vld [vmem:[%s4875_s25 + $0x178] sm:$0xf0]  ;;  %v4039_v47 = vld [vmem:[%s4875_s25 + $0x26c] sm:$0xf]  ;;  %v5358_v56 = vmul.f32 -0.6488975, %v2606_v37 }
 0x102   : > { %v2186_v59 = vpop.f32.mrf.mxu0  ;;  %v4071_v55 = vld [vmem:[%s4875_s25 + $0x36c] sm:$0xf]  ;;  %v3373_v57 = vld [vmem:[%s4875_s25 + $0x378] sm:$0xf0]  ;;  %v3120_v2 = vor.u32 %v4007_v40, %v3117_v41  ;;  %v2664_v40 = vmul.f32 0.45714232, %v2660_v22 }
 0x103   : > { %2479 = vmatpush.bf16.msrb.mxu3 %v3868_v13  ;;  %2441 = vmatpush.bf16.msrb.mxu0 %v3468_v21  ;;  %v4015_v13 = vld [vmem:[%s4875_s25 + $0x1ac] sm:$0xf]  ;;  %v3024_v21 = vor.u32 %v3983_v11, %v3021_v12  ;;  %v2973_v62 = vld [vmem:[%s4875_s25 + $0x58] sm:$0xf0]  ;;  %v3376_v10 = vor.u32 %v4071_v55, %v3373_v57 }
 0x104   : > { %v2212_v6 = vpop.f32.mrf.mxu2  ;;  %v3971_v59 = vld [vmem:[%s4875_s25 + $0x4c] sm:$0xf]  ;;  %v3229_v11 = vld [vmem:[%s4875_s25 + $0x258] sm:$0xf0] }
 0x105   : > { %2454 = vmatpush.bf16.msrb.mxu1 %v3596_v26  ;;  %2467 = vmatpush.bf16.msrb.mxu2 %v3724_v27  ;;  %v3152_v26 = vor.u32 %v4015_v13, %v3149_v15  ;;  %v3280_v27 = vor.u32 %v4047_v16, %v3277_v18  ;;  %v4003_v6 = vld [vmem:[%s4875_s25 + $0x14c] sm:$0xf]  ;;  %v3357_v18 = vld [vmem:[%s4875_s25 + $0x358] sm:$0xf0]  ;;  %v2976_v19 = vor.u32 %v3971_v59, %v2973_v62 }
 0x106   : > { %v4067_v16 = vld [vmem:[%s4875_s25 + $0x34c] sm:$0xf]  ;;  %v2957_v28 = vld [vmem:[%s4875_s25 + $0x38] sm:$0xf0] }
 0x107   : > { %2480 = vmatpush.bf16.msrb.mxu3 %v3852_v32  ;;  %2442 = vmatpush.bf16.msrb.mxu0 %v3452_v39  ;;  %v4043_v32 = vld [vmem:[%s4875_s25 + $0x28c] sm:$0xf]  ;;  %v2989_v39 = vld [vmem:[%s4875_s25 + $0x78] sm:$0xf0] }
 0x108   : > { %v2992_v61 = vor.u32 %v3975_v36, %v2989_v39  ;;  %v3967_v24 = vld [vmem:[%s4875_s25 + $0x2c] sm:$0xf]  ;;  %v3213_v36 = vld [vmem:[%s4875_s25 + $0x238] sm:$0xf0] }
 0x109   : > { %2455 = vmatpush.bf16.msrb.mxu1 %v3580_v43  ;;  %2468 = vmatpush.bf16.msrb.mxu2 %v3708_v46  ;;  %v3136_v43 = vor.u32 %v4011_v29, %v3133_v30  ;;  %v3264_v46 = vor.u32 %v4043_v32, %v3261_v33  ;;  %v3999_v29 = vld [vmem:[%s4875_s25 + $0x12c] sm:$0xf]  ;;  %v3085_v30 = vld [vmem:[%s4875_s25 + $0x138] sm:$0xf0]  ;;  %v3360_v32 = vor.u32 %v4067_v16, %v3357_v18 }
 0x10a   : > { %2443 = vmatmul.bf16.vlgmr.msrb.gmra.mxu0 %v5039_v4  ;;  %v4063_v37 = vld [vmem:[%s4875_s25 + $0x32c] sm:$0xf]  ;;  %v2960_v41 = vor.u32 %v3967_v24, %v2957_v28  ;;  %v3197_v55 = vld [vmem:[%s4875_s25 + $0x218] sm:$0xf0] }
 0x10b   : > { %2481 = vmatpush.bf16.msrb.mxu3 %v3836_v49  ;;  %2487 = vmatpush.bf16.msra.mxu0 %v3056_v50  ;;  %v2621_v50 = vld [vmem:[%s5349_s13] sm:$0xff]  ;;  %v4059_v57 = vld [vmem:[%s4875_s25 + $0x30c] sm:$0xf]  ;;  %v3549_v18 = vld [vmem:[%s4875_s25 + $0x4d8] sm:$0xf0] }
 0x10c   : > { %2469 = vmatmul.bf16.vlgmr.msrb.gmra.mxu2 %v5035_v0  ;;  %2456 = vmatmul.bf16.vlgmr.msrb.gmra.mxu1 %v5050_v17  ;;  %v2625_v63 = vmul.f32 1.0460736, %v2621_v50  ;;  %v4027_v50 = vld [vmem:[%s4875_s25 + $0x20c] sm:$0xf]  ;;  %v3805_v24 = vld [vmem:[%s4875_s25 + $0x6d8] sm:$0xf0] }
 0x10d   : > { %2500 = vmatpush.bf16.msra.mxu1 %v3184_v52  ;;  %2513 = vmatpush.bf16.msra.mxu2 %v3312_v54  ;;  %v2236_v42 = vpop.f32.mrf.mxu0  ;;  %v2249_v49 = vpop.f32.mrf.mxu1  ;;  %v3392_v52 = vor.u32 %v4075_v34, %v3389_v35  ;;  %v3245_v54 = vld [vmem:[%s4875_s25 + $0x278] sm:$0xf0]  ;;  %v4031_v35 = vld [vmem:[%s4875_s25 + $0x22c] sm:$0xf] }
 0x10e   : > { %2482 = vmatmul.bf16.vlgmr.msrb.gmra.mxu3 %v5041_v5  ;;  %v2237_v48 = vadd.f32 %v2236_v42, %v2224_v25  ;;  %v3248_v3 = vor.u32 %v4039_v47, %v3245_v54  ;;  %v3963_v42 = vld [vmem:[%s4875_s25 + $0xc] sm:$0xf]  ;;  %v3216_v47 = vor.u32 %v4031_v35, %v3213_v36  ;;  %v3789_v36 = vld [vmem:[%s4875_s25 + $0x6b8] sm:$0xf0] }
 0x10f   : > { %2526 = vmatpush.bf16.msra.mxu3 %v3440_v60  ;;  %2488 = vmatpush.bf16.msra.mxu0 %v3040_v7  ;;  %v2645_v60 = vld [vmem:[%s500_s20] sm:$0xf]  ;;  %v3101_v7 = vld [vmem:[%s4875_s25 + $0x158] sm:$0xf0]  ;;  %v4151_v62 = vld [vmem:[%s4875_s25 + $0x5ec] sm:$0xf] }
 0x110   : > { %v2250_v58 = vadd.f32 %v2249_v49, %v2237_v48  ;;  %v5370_v15 = vmul.f32 -64.82487, %v2645_v60  ;;  %v3995_v48 = vld [vmem:[%s4875_s25 + $0x10c] sm:$0xf]  ;;  %v3069_v49 = vld [vmem:[%s4875_s25 + $0x118] sm:$0xf0] }
 0x111   : > { %2501 = vmatpush.bf16.msra.mxu1 %v3168_v8  ;;  %2514 = vmatpush.bf16.msra.mxu2 %v3296_v9  ;;  %v4035_v8 = vld [vmem:[%s4875_s25 + $0x24c] sm:$0xf]  ;;  %v2262_v9 = vpop.f32.mrf.mxu2  ;;  %v2275_v13 = vpop.f32.mrf.mxu3 }
 0x112   : > { %v2263_v12 = vadd.f32 %v2262_v9, %v2250_v58  ;;  %v2648_v34 = vperm.slane %v5370_v15, 0  ;;  %v3325_v58 = vld [vmem:[%s4875_s25 + $0x318] sm:$0xf0]  ;;  %v4119_v60 = vld [vmem:[%s4875_s25 + $0x4ec] sm:$0xf] }
 0x113   : > { %2527 = vmatpush.bf16.msra.mxu3 %v3424_v14  ;;  %2489 = vmatpush.bf16.msra.mxu0 %v3024_v21  ;;  %v2609_v14 = vperm.slane %v5358_v56, 0  ;;  %v2637_v21 = vadd.f32 %v2633_v1, %v2625_v63  ;;  %v4215_v9 = vld [vmem:[%s4875_s25 + $0x7ec] sm:$0xf] }
 0x114   : > { %v2276_v20 = vadd.f32 %v2275_v13, %v2263_v12  ;;  %v4115_v16 = vld [vmem:[%s4875_s25 + $0x4cc] sm:$0xf] }
 0x115   : > { %2502 = vmatpush.bf16.msra.mxu1 %v3152_v26  ;;  %2515 = vmatpush.bf16.msra.mxu2 %v3280_v27  ;;  %v2238_v25 = vpop.f32.mrf.mxu0  ;;  %v3104_v26 = vor.u32 %v4003_v6, %v3101_v7  ;;  %v3232_v27 = vor.u32 %v4035_v8, %v3229_v11  ;;  %v3821_v6 = vld [vmem:[%s4875_s25 + $0x6f8] sm:$0xf0]  ;;  %v3072_v7 = vor.u32 %v3995_v48, %v3069_v49  ;;  %v4179_v22 = vld [vmem:[%s4875_s25 + $0x6cc] sm:$0xf] }
 0x116   : > { %v2617_v33 = vmul.f32 %v2609_v14, %v2276_v20  ;;  %v3200_v8 = vor.u32 %v4027_v50, %v3197_v55  ;;  %v3328_v11 = vor.u32 %v4059_v57, %v3325_v58  ;;  %v4211_v25 = vld [vmem:[%s4875_s25 + $0x7cc] sm:$0xf]  ;;  %v3901_v49 = vld [vmem:[%s4875_s25 + $0x798] sm:$0xf0] }
 0x117   : > { %2528 = vmatpush.bf16.msra.mxu3 %v3408_v31  ;;  %2490 = vmatpush.bf16.msra.mxu0 %v3008_v38  ;;  %v2251_v31 = vpop.f32.mrf.mxu1  ;;  %v3341_v38 = vld [vmem:[%s4875_s25 + $0x338] sm:$0xf0]  ;;  %v4175_v35 = vld [vmem:[%s4875_s25 + $0x6ac] sm:$0xf] }
 0x118   : > { %v2641_v39 = vadd.f32 %v2637_v21, %v2617_v33  ;;  %v3344_v54 = vor.u32 %v4063_v37, %v3341_v38  ;;  %v3677_v21 = vld [vmem:[%s4875_s25 + $0x5d8] sm:$0xf0]  ;;  %v4207_v37 = vld [vmem:[%s4875_s25 + $0x7ac] sm:$0xf] }
 0x119   : > { %2503 = vmatpush.bf16.msra.mxu1 %v3136_v43  ;;  %2516 = vmatpush.bf16.msra.mxu2 %v3264_v46  ;;  %v2941_v43 = vld [vmem:[%s4875_s25 + $0x18] sm:$0xf0]  ;;  %v3088_v46 = vor.u32 %v3999_v29, %v3085_v30  ;;  %v2264_v51 = vpop.f32.mrf.mxu2  ;;  %v2277_v59 = vpop.f32.mrf.mxu3  ;;  %v3808_v29 = vor.u32 %v4179_v22, %v3805_v24  ;;  %v4111_v30 = vld [vmem:[%s4875_s25 + $0x4ac] sm:$0xf] }
 0x11a   : > { %v2944_v1 = vor.u32 %v3963_v42, %v2941_v43  ;;  %v3533_v31 = vld [vmem:[%s4875_s25 + $0x4b8] sm:$0xf0]  ;;  %v4139_v43 = vld [vmem:[%s4875_s25 + $0x58c] sm:$0xf] }
 0x11b   : > { %2529 = vmatpush.bf16.msra.mxu3 %v3392_v52  ;;  %2491 = vmatpush.bf16.msra.mxu0 %v2992_v61  ;;  %v2656_v52 = vadd.f32 %v2648_v34, %v2641_v39  ;;  %v3565_v61 = vld [vmem:[%s4875_s25 + $0x4f8] sm:$0xf0]  ;;  %v3536_v39 = vor.u32 %v4111_v30, %v3533_v31  ;;  %v4203_v48 = vld [vmem:[%s4875_s25 + $0x78c] sm:$0xf] }
 0x11c   : > { %v3568_v12 = vor.u32 %v4119_v60, %v3565_v61  ;;  %v3661_v34 = vld [vmem:[%s4875_s25 + $0x5b8] sm:$0xf0]  ;;  %v4135_v57 = vld [vmem:[%s4875_s25 + $0x56c] sm:$0xf]  ;;  %v3904_v59 = vor.u32 %v4203_v48, %v3901_v49 }
 0x11d   : > { %2504 = vmatpush.bf16.msra.mxu1 %v3120_v2  ;;  %2517 = vmatpush.bf16.msra.mxu2 %v3248_v3  ;;  %v2668_v63 = vadd.f32 %v2664_v40, %v2656_v52  ;;  %v3693_v2 = vld [vmem:[%s4875_s25 + $0x5f8] sm:$0xf0]  ;;  %v4183_v3 = vld [vmem:[%s4875_s25 + $0x6ec] sm:$0xf]  ;;  %v3792_v40 = vor.u32 %v4175_v35, %v3789_v36 }
 0x11e   : > { %v3696_v13 = vor.u32 %v4151_v62, %v3693_v2  ;;  %v3824_v14 = vor.u32 %v4183_v3, %v3821_v6  ;;  %v3917_v38 = vld [vmem:[%s4875_s25 + $0x7b8] sm:$0xf0]  ;;  %v4167_v61 = vld [vmem:[%s4875_s25 + $0x66c] sm:$0xf] }
 0x11f   : > { %2530 = vmatpush.bf16.msra.mxu3 %v3376_v10  ;;  %2492 = vmatpush.bf16.msra.mxu0 %v2976_v19  ;;  %v3949_v10 = vld [vmem:[%s4875_s25 + $0x7f8] sm:$0xf0]  ;;  %2672 = vst [vmem:[%s5404_s0] sm:$0xff] %v2668_v63  ;;  %v4147_v19 = vld [vmem:[%s4875_s25 + $0x5cc] sm:$0xf] }
 0x120   : > { %v3952_v20 = vor.u32 %v4215_v9, %v3949_v10  ;;  %v3680_v28 = vor.u32 %v4147_v19, %v3677_v21  ;;  %v3517_v42 = vld [vmem:[%s4875_s25 + $0x498] sm:$0xf0]  ;;  %v4199_v63 = vld [vmem:[%s4875_s25 + $0x76c] sm:$0xf] }
 0x121   : > { %2505 = vmatpush.bf16.msra.mxu1 %v3104_v26  ;;  %2518 = vmatpush.bf16.msra.mxu2 %v3232_v27  ;;  %v3933_v26 = vld [vmem:[%s4875_s25 + $0x7d8] sm:$0xf0]  ;;  %v3552_v27 = vor.u32 %v4115_v16, %v3549_v18  ;;  %v4131_v9 = vld [vmem:[%s4875_s25 + $0x54c] sm:$0xf] }
 0x122   : > { %v3936_v33 = vor.u32 %v4211_v25, %v3933_v26  ;;  %v3501_v55 = vld [vmem:[%s4875_s25 + $0x478] sm:$0xf0]  ;;  %v4195_v18 = vld [vmem:[%s4875_s25 + $0x74c] sm:$0xf] }
 0x123   : > { %2531 = vmatpush.bf16.msra.mxu3 %v3360_v32  ;;  %2493 = vmatpush.bf16.msra.mxu0 %v2960_v41  ;;  %v4143_v32 = vld [vmem:[%s4875_s25 + $0x5ac] sm:$0xf]  ;;  %v3629_v60 = vld [vmem:[%s4875_s25 + $0x578] sm:$0xf0] }
 0x124   : > { %v4107_v41 = vld [vmem:[%s4875_s25 + $0x48c] sm:$0xf]  ;;  %v3757_v62 = vld [vmem:[%s4875_s25 + $0x678] sm:$0xf0]  ;;  %v3632_v3 = vor.u32 %v4135_v57, %v3629_v60 }
 0x125   : > { %2506 = vmatpush.bf16.msra.mxu1 %v3088_v46  ;;  %2519 = vmatpush.bf16.msra.mxu2 %v3216_v47  ;;  %v3645_v46 = vld [vmem:[%s4875_s25 + $0x598] sm:$0xf0]  ;;  %v3760_v6 = vor.u32 %v4167_v61, %v3757_v62  ;;  %v4095_v25 = vld [vmem:[%s4875_s25 + $0x42c] sm:$0xf] }
 0x126   : > { %v3773_v47 = vld [vmem:[%s4875_s25 + $0x698] sm:$0xf0]  ;;  %v3648_v51 = vor.u32 %v4139_v43, %v3645_v46  ;;  %v4159_v31 = vld [vmem:[%s4875_s25 + $0x62c] sm:$0xf] }
 0x127   : > { %2532 = vmatpush.bf16.msra.mxu3 %v3344_v54  ;;  %2494 = vmatpush.bf16.msra.mxu0 %v2944_v1  ;;  %v5435_v50 = vpop.f32.mrf.mxu0  ;;  %v4103_v54 = vld [vmem:[%s4875_s25 + $0x46c] sm:$0xf]  ;;  %v3885_v1 = vld [vmem:[%s4875_s25 + $0x778] sm:$0xf0] }
 0x128   : > { %v3504_v2 = vor.u32 %v4103_v54, %v3501_v55  ;;  %v3869_v19 = vld [vmem:[%s4875_s25 + $0x758] sm:$0xf0]  ;;  %v4155_v43 = vld [vmem:[%s4875_s25 + $0x60c] sm:$0xf] }
 0x129   : > { %2507 = vmatpush.bf16.msra.mxu1 %v3072_v7  ;;  %2520 = vmatpush.bf16.msra.mxu2 %v3200_v8  ;;  %v5440_v58 = vpop.f32.mrf.mxu1  ;;  %v4099_v7 = vld [vmem:[%s4875_s25 + $0x44c] sm:$0xf]  ;;  %v3485_v8 = vld [vmem:[%s4875_s25 + $0x458] sm:$0xf0] }
 0x12a   : > { %2495 = vmatmul.bf16.vlgmr.msra.gmra.mxu0 %v4988_v44  ;;  %v3920_v44 = vor.u32 %v4207_v37, %v3917_v38  ;;  %v3469_v26 = vld [vmem:[%s4875_s25 + $0x438] sm:$0xf0]  ;;  %v4091_v38 = vld [vmem:[%s4875_s25 + $0x40c] sm:$0xf] }
 0x12b   : > { %2533 = vmatpush.bf16.msra.mxu3 %v3328_v11  ;;  %2539 = vmatpush.bf16.msrb.mxu0 %v3568_v12  ;;  %v3888_v11 = vor.u32 %v4199_v63, %v3885_v1  ;;  %v3613_v12 = vld [vmem:[%s4875_s25 + $0x558] sm:$0xf0]  ;;  %v3472_v35 = vor.u32 %v4095_v25, %v3469_v26  ;;  %v2622_v61 = vld [vmem:[%s5349_s13 + $0x8] sm:$0xff] }
 0x12c   : > { %2521 = vmatmul.bf16.vlgmr.msra.gmra.mxu2 %v4978_v23  ;;  %2508 = vmatmul.bf16.vlgmr.msra.gmra.mxu1 %v4995_v53  ;;  %v3664_v23 = vor.u32 %v4143_v32, %v3661_v34  ;;  %v3520_v53 = vor.u32 %v4107_v41, %v3517_v42  ;;  %v3616_v22 = vor.u32 %v4131_v9, %v3613_v12  ;;  %v3597_v30 = vld [vmem:[%s4875_s25 + $0x538] sm:$0xf0]  ;;  %v2626_v62 = vmul.f32 1.0460736, %v2622_v61 }
 0x12d   : > { %2552 = vmatpush.bf16.msrb.mxu1 %v3696_v13  ;;  %2565 = vmatpush.bf16.msrb.mxu2 %v3824_v14  ;;  %v4163_v13 = vld [vmem:[%s4875_s25 + $0x64c] sm:$0xf]  ;;  %v3741_v14 = vld [vmem:[%s4875_s25 + $0x658] sm:$0xf0]  ;;  %v2649_v9 = vperm.slane %v5370_v15, 1 }
 0x12e   : > { %2534 = vmatmul.bf16.vlgmr.msra.gmra.mxu3 %v4990_v45  ;;  %v4171_v45 = vld [vmem:[%s4875_s25 + $0x68c] sm:$0xf]  ;;  %v3744_v24 = vor.u32 %v4163_v13, %v3741_v14  ;;  %v3725_v32 = vld [vmem:[%s4875_s25 + $0x638] sm:$0xf0] }
 0x12f   : > { %2578 = vmatpush.bf16.msrb.mxu3 %v3952_v20  ;;  %2540 = vmatpush.bf16.msrb.mxu0 %v3552_v27  ;;  %v3776_v52 = vor.u32 %v4171_v45, %v3773_v47  ;;  %v2314_v10 = vpop.f32.mrf.mxu2  ;;  %v3488_v20 = vor.u32 %v4099_v7, %v3485_v8  ;;  %v2290_v21 = vpop.f32.mrf.mxu0  ;;  %v4127_v27 = vld [vmem:[%s4875_s25 + $0x52c] sm:$0xf]  ;;  %v3853_v34 = vld [vmem:[%s4875_s25 + $0x738] sm:$0xf0]  ;;  %v3728_v37 = vor.u32 %v4159_v31, %v3725_v32 }
 0x130   : > { %v3600_v36 = vor.u32 %v4127_v27, %v3597_v30  ;;  %v3581_v42 = vld [vmem:[%s4875_s25 + $0x518] sm:$0xf0]  ;;  %v4187_v45 = vld [vmem:[%s4875_s25 + $0x70c] sm:$0xf] }
 0x131   : > { %2553 = vmatpush.bf16.msrb.mxu1 %v3680_v28  ;;  %2566 = vmatpush.bf16.msrb.mxu2 %v3808_v29  ;;  %v2327_v16 = vpop.f32.mrf.mxu3  ;;  %v2303_v28 = vpop.f32.mrf.mxu1  ;;  %v3872_v29 = vor.u32 %v4195_v18, %v3869_v19  ;;  %v3837_v47 = vld [vmem:[%s4875_s25 + $0x718] sm:$0xf0] }
 0x133   : > { %2579 = vmatpush.bf16.msrb.mxu3 %v3936_v33  ;;  %2541 = vmatpush.bf16.msrb.mxu0 %v3536_v39  ;;  %v4191_v33 = vld [vmem:[%s4875_s25 + $0x72c] sm:$0xf]  ;;  %v3453_v39 = vld [vmem:[%s4875_s25 + $0x418] sm:$0xf0] }
 0x134   : > { %v3856_v41 = vor.u32 %v4191_v33, %v3853_v34  ;;  %v3456_v48 = vor.u32 %v4091_v38, %v3453_v39  ;;  %v2623_v33 = vld [vmem:[%s5349_s13 + $0x10] sm:$0xff] }
 0x135   : > { %2554 = vmatpush.bf16.msrb.mxu1 %v3664_v23  ;;  %2567 = vmatpush.bf16.msrb.mxu2 %v3792_v40  ;;  %v4123_v23 = vld [vmem:[%s4875_s25 + $0x50c] sm:$0xf]  ;;  %v2631_v34 = vld [vmem:[%s5353_s18 + $0x10] sm:$0xff] }
 0x136   : > { %v3584_v49 = vor.u32 %v4123_v23, %v3581_v42 }
 0x137   : > { %2580 = vmatpush.bf16.msrb.mxu3 %v3920_v44  ;;  %2542 = vmatpush.bf16.msrb.mxu0 %v3520_v53  ;;  %v2316_v40 = vpop.f32.mrf.mxu2  ;;  %v3709_v44 = vld [vmem:[%s4875_s25 + $0x618] sm:$0xf0] }
 0x138   : > { %v3712_v53 = vor.u32 %v4155_v43, %v3709_v44  ;;  %v2611_v40 = vperm.slane %v5358_v56, 2  ;;  %v2662_v44 = vld [vmem:[%s5375_s27 + $0x10] sm:$0xff] }
 0x139   : > { %2555 = vmatpush.bf16.msrb.mxu1 %v3648_v51  ;;  %2568 = vmatpush.bf16.msrb.mxu2 %v3776_v52  ;;  %v2329_v46 = vpop.f32.mrf.mxu3  ;;  %v3840_v51 = vor.u32 %v4187_v45, %v3837_v47  ;;  %v2302_v52 = vadd.f32 %v5440_v58, %v5435_v50  ;;  %v2630_v50 = vld [vmem:[%s5353_s18 + $0x8] sm:$0xff]  ;;  %v2650_v47 = vperm.slane %v5370_v15, 2 }
 0x13a   : > { %v2634_v63 = vmul.f32 0.35443938, %v2630_v50 }
 0x13b   : > { %2581 = vmatpush.bf16.msrb.mxu3 %v3904_v59  ;;  %2543 = vmatpush.bf16.msrb.mxu0 %v3504_v2  ;;  %v2315_v54 = vadd.f32 %v2314_v10, %v2302_v52 }
 0x13d   : > { %2556 = vmatpush.bf16.msrb.mxu1 %v3632_v3  ;;  %2569 = vmatpush.bf16.msrb.mxu2 %v3760_v6  ;;  %v2328_v55 = vadd.f32 %v2327_v16, %v2315_v54 }
 0x13f   : > { %2582 = vmatpush.bf16.msrb.mxu3 %v3888_v11  ;;  %2544 = vmatpush.bf16.msrb.mxu0 %v3488_v20 }
 0x141   : > { %2557 = vmatpush.bf16.msrb.mxu1 %v3616_v22  ;;  %2570 = vmatpush.bf16.msrb.mxu2 %v3744_v24 }
 0x143   : > { %2583 = vmatpush.bf16.msrb.mxu3 %v3872_v29  ;;  %2545 = vmatpush.bf16.msrb.mxu0 %v3472_v35 }
 0x145   : > { %2558 = vmatpush.bf16.msrb.mxu1 %v3600_v36  ;;  %2571 = vmatpush.bf16.msrb.mxu2 %v3728_v37  ;;  %v2627_v36 = vmul.f32 1.0460736, %v2623_v33  ;;  %v2635_v37 = vmul.f32 0.35443938, %v2631_v34 }
 0x147   : > { %2584 = vmatpush.bf16.msrb.mxu3 %v3856_v41  ;;  %2546 = vmatpush.bf16.msrb.mxu0 %v3456_v48  ;;  %v2340_v57 = vpop.f32.mrf.mxu0  ;;  %v2639_v42 = vadd.f32 %v2635_v37, %v2627_v36 }
 0x148   : > { %v2341_v59 = vadd.f32 %v2340_v57, %v2328_v55 }
 0x149   : > { %2559 = vmatpush.bf16.msrb.mxu1 %v3584_v49  ;;  %2572 = vmatpush.bf16.msrb.mxu2 %v3712_v53  ;;  %v2353_v60 = vpop.f32.mrf.mxu1  ;;  %v2666_v49 = vmul.f32 0.45714232, %v2662_v44 }
 0x14a   : > { %2547 = vmatmul.bf16.vlgmr.msrb.gmra.mxu0 %v5039_v4  ;;  %v2354_v58 = vadd.f32 %v2353_v60, %v2341_v59 }
 0x14b   : > { %2585 = vmatpush.bf16.msrb.mxu3 %v3840_v51 }
 0x14c   : > { %2560 = vmatmul.bf16.vlgmr.msrb.gmra.mxu1 %v5050_v17  ;;  %2573 = vmatmul.bf16.vlgmr.msrb.gmra.mxu2 %v5035_v0  ;;  %v2610_v17 = vperm.slane %v5358_v56, 1  ;;  %v2638_v0 = vadd.f32 %v2634_v63, %v2626_v62 }
 0x14e   : > { %2586 = vmatmul.bf16.vlgmr.msrb.gmra.mxu3 %v5041_v5  ;;  %v2661_v5 = vld [vmem:[%s5375_s27 + $0x8] sm:$0xff] }
 0x14f   : > { %v2366_v1 = vpop.f32.mrf.mxu2  ;;  %v2342_v6 = vpop.f32.mrf.mxu0  ;;  %v2665_v11 = vmul.f32 0.45714232, %v2661_v5 }
 0x150   : > { %v2367_v2 = vadd.f32 %v2366_v1, %v2354_v58  ;;  %v2632_v6 = vld [vmem:[%s5353_s18 + $0x18] sm:$0xff] }
 0x151   : > { %v2379_v4 = vpop.f32.mrf.mxu3  ;;  %v2355_v7 = vpop.f32.mrf.mxu1 }
 0x152   : > { %v2380_v3 = vadd.f32 %v2379_v4, %v2367_v2 }
 0x154   : > { %v2618_v8 = vmul.f32 %v2610_v17, %v2380_v3 }
 0x156   : > { %v2642_v10 = vadd.f32 %v2638_v0, %v2618_v8  ;;  %v2624_v0 = vld [vmem:[%s5349_s13 + $0x18] sm:$0xff]  ;;  %v2636_v8 = vmul.f32 0.35443938, %v2632_v6 }
 0x157   : > { %v2368_v12 = vpop.f32.mrf.mxu2  ;;  %v2628_v7 = vmul.f32 1.0460736, %v2624_v0 }
 0x158   : > { %v2657_v13 = vadd.f32 %v2649_v9, %v2642_v10  ;;  %v2612_v12 = vperm.slane %v5358_v56, 3 }
 0x159   : > { %v2381_v14 = vpop.f32.mrf.mxu3 }
 0x15a   : > { %v2669_v16 = vadd.f32 %v2665_v11, %v2657_v13 }
 0x15c   : > { %2673 = vst [vmem:[%s5404_s0 + $0x8] sm:$0xff] %v2669_v16 }
 0x167   : > { %v2392_v18 = vpop.f32.mrf.mxu0 }
 0x169   : > { %v2405_v19 = vpop.f32.mrf.mxu1 }
 0x16a   : > { %v2406_v27 = vadd.f32 %v2405_v19, %v2392_v18  ;;  %v2640_v18 = vadd.f32 %v2636_v8, %v2628_v7  ;;  %v2663_v19 = vld [vmem:[%s5375_s27 + $0x18] sm:$0xff] }
 0x16f   : > { %v2418_v20 = vpop.f32.mrf.mxu2  ;;  %v2394_v22 = vpop.f32.mrf.mxu0 }
 0x170   : > { %v2419_v28 = vadd.f32 %v2418_v20, %v2406_v27 }
 0x171   : > { %v2431_v21 = vpop.f32.mrf.mxu3  ;;  %v2407_v24 = vpop.f32.mrf.mxu1 }
 0x172   : > { %v2432_v29 = vadd.f32 %v2431_v21, %v2419_v28  ;;  %v2651_v21 = vperm.slane %v5370_v15, 3  ;;  %v2667_v24 = vmul.f32 0.45714232, %v2663_v19 }
 0x177   : > { %v2420_v25 = vpop.f32.mrf.mxu2 }
 0x179   : > { %v2433_v26 = vpop.f32.mrf.mxu3 }
 0x187   : > { %v2444_v30 = vpop.f32.mrf.mxu0 }
 0x188   : > { %v2445_v31 = vadd.f32 %v2444_v30, %v2432_v29 }
 0x189   : > { %v2457_v32 = vpop.f32.mrf.mxu1 }
 0x18a   : > { %v2458_v35 = vadd.f32 %v2457_v32, %v2445_v31 }
 0x18f   : > { %v2470_v38 = vpop.f32.mrf.mxu2  ;;  %v2446_v43 = vpop.f32.mrf.mxu0 }
 0x190   : > { %v2471_v39 = vadd.f32 %v2470_v38, %v2458_v35 }
 0x191   : > { %v2483_v23 = vpop.f32.mrf.mxu3  ;;  %v2459_v46 = vpop.f32.mrf.mxu1 }
 0x192   : > { %v2484_v41 = vadd.f32 %v2483_v23, %v2471_v39 }
 0x194   : > { %v2619_v45 = vmul.f32 %v2611_v40, %v2484_v41 }
 0x196   : > { %v2643_v48 = vadd.f32 %v2639_v42, %v2619_v45 }
 0x197   : > { %v2472_v53 = vpop.f32.mrf.mxu2 }
 0x198   : > { %v2658_v51 = vadd.f32 %v2650_v47, %v2643_v48 }
 0x199   : > { %v2485_v52 = vpop.f32.mrf.mxu3 }
 0x19a   : > { %v2670_v54 = vadd.f32 %v2666_v49, %v2658_v51 }
 0x19c   : > { %2674 = vst [vmem:[%s5404_s0 + $0x10] sm:$0xff] %v2670_v54 }
 0x1a7   : > { %v2496_v55 = vpop.f32.mrf.mxu0 }
 0x1a9   : > { %v2509_v57 = vpop.f32.mrf.mxu1 }
 0x1aa   : > { %v2510_v63 = vadd.f32 %v2509_v57, %v2496_v55 }
 0x1af   : > { %v2522_v59 = vpop.f32.mrf.mxu2  ;;  %v2498_v61 = vpop.f32.mrf.mxu0 }
 0x1b0   : > { %v2523_v1 = vadd.f32 %v2522_v59, %v2510_v63 }
 0x1b1   : > { %v2535_v60 = vpop.f32.mrf.mxu3  ;;  %v2511_v50 = vpop.f32.mrf.mxu1 }
 0x1b2   : > { %v2536_v2 = vadd.f32 %v2535_v60, %v2523_v1 }
 0x1b7   : > { %v2524_v58 = vpop.f32.mrf.mxu2 }
 0x1b9   : > { %v2537_v62 = vpop.f32.mrf.mxu3 }
 0x1c7   : > { %v2548_v4 = vpop.f32.mrf.mxu0 }
 0x1c8   : > { %v2549_v3 = vadd.f32 %v2548_v4, %v2536_v2 }
 0x1c9   : > { %v2561_v17 = vpop.f32.mrf.mxu1 }
 0x1ca   : > { %v2562_v5 = vadd.f32 %v2561_v17, %v2549_v3 }
 0x1cf   : > { %v2574_v9 = vpop.f32.mrf.mxu2  ;;  %v2550_v13 = vpop.f32.mrf.mxu0 }
 0x1d0   : > { %v2575_v10 = vadd.f32 %v2574_v9, %v2562_v5 }
 0x1d1   : > { %v2587_v11 = vpop.f32.mrf.mxu3  ;;  %v2563_v14 = vpop.f32.mrf.mxu1 }
 0x1d2   : > { %v2588_v16 = vadd.f32 %v2587_v11, %v2575_v10 }
 0x1d4   : > { %v2620_v20 = vmul.f32 %v2612_v12, %v2588_v16 }
 0x1d6   : > { %v2644_v22 = vadd.f32 %v2640_v18, %v2620_v20 }
 0x1d7   : > { %v2576_v25 = vpop.f32.mrf.mxu2 }
 0x1d8   : > { %v2659_v56 = vadd.f32 %v2651_v21, %v2644_v22 }
 0x1d9   : > { %v2589_v26 = vpop.f32.mrf.mxu3 }
 0x1da   : > { %v2671_v27 = vadd.f32 %v2667_v24, %v2659_v56 }
 0x1dc   : > { %2675 = vst [vmem:[%s5404_s0 + $0x18] sm:$0xff] %v2671_v27 }
 0x1dd   : > { %4597 = shalt.err (!%p4594_p0)
}
 0x1de   : > { %4239 = dma.vmem_to_hbm [thread:$0]  (%p4769_p9), %s2691_s8, 512, %s2693_s30, %s2677_s14  }
 0x1df PF: > { %s5573_s29 = sld [smem:[#allocation19_spill]]  ;;  %p4268_p2 = pnand %p2902_p1, %p4776_p11 }
 0x1e0   : > { %s5575_s20 = sld [smem:[#allocation22_spill]] }
 0x1e1   : > { %p4269_p3 = pneg %p4268_p2 }
 0x1e5   : > { %s2704_s27 = sand.u32 1, %s5573_s29  }
 0x1e6   : > { %s2705_s0 = scalar_lea.sflag [#allocation5], %s2704_s27 }
 0x1e7   : > { %4635 = dma.done.wait (%p4269_p3), %s2705_s0, 512  }
 0x1e8   : > { %4637 = vsyncadd (%p4269_p3), %s2705_s0, 4294966784  ;;  %s23_s10 = sadd.s32 1, %s5575_s20   ;;  %s5576_s23 = sld [smem:[#allocation20_spill]] }
 0x1e9   : > { %p20_p6 = scmp.ge.s32.totalorder %s23_s10, 4   ;;  %s5577_s29 = sld [smem:[#allocation25_spill]] }
 0x1ea   : > { %s5578_s21 = sld [smem:[#allocation23_spill]]  ;;  %s5579_s27 = smov %s4644_s28 }
 0x1eb   : > { %s5581_s30 = smov %s4656_s9 }
 0x1ec   :  { %22 = sbr.rel (!%p20_p6) target bundleno = 9 (0x9), region = 169 }
 0x1ee   : > { %s5580_s28 = smov %s5576_s23 }
 0x1f0   : > { %s5582_s9 = smov %s5578_s21 }
 0x1f1   :  { %2711 = vsyncpa [#allocation4], 1 }
 0x1f2   :  { %2713 = vsyncpa [#allocation4 + $0x1], 1 }
 0x1f3   :  { %2714 = vsyncpa [#allocation7], 1 }
 0x1f4   :  { %2715 = vsyncpa [#allocation5], 1 }
 0x1f5   :  { %2717 = vsyncpa [#allocation5 + $0x1], 1 }

</bundles_post_ra>
